<compile_context>
chip_gen: v7x
topology: tpu7x:2x2x1
jax: 0.10.0
libtpu: 0.0.40
codegen_flags: <defaults>
</compile_context>

<pallas_src>
import jax
import jax.numpy as jnp
from jax.experimental import pallas as pl
from jax.experimental.pallas import tpu as pltpu

GROUPS = 8
EPS = 1e-5


def _pick_nb(N, H, W, Cin, Cout):
    """Largest batch block per grid step under vreg / VMEM pressure limits."""
    Hp, Wp = H + 2, W + 2
    best = 1
    for nb in range(1, N + 1):
        if N % nb:
            continue
        if nb * H * W > 256:            # keep the (Nb*H*W, Cout) accumulators in vregs
            continue
        vmem = 4 * (2 * nb * Hp * Wp * Cin       # double-buffered input block
                    + 2 * nb * H * W * Cout      # double-buffered output block
                    + nb * Hp * Wp * Cout        # padded GN1+ReLU scratch
                    + nb * H * W * Cout          # shortcut scratch
                    + 9 * (Cin + Cout) * Cout)   # weights
        if vmem > 8 * 1024 * 1024:
            continue
        best = nb
    return best


def _make_kernel(Nb, H, W, Cin, Cout):
    HW = H * W
    R = Nb * HW
    f32 = jnp.float32

    def kernel(xpad_ref, w1_ref, g1_ref, b1_ref, w2_ref, g2_ref, b2_ref,
               ws_ref, gs_ref, bs_ref, P_ref, out_ref, yp_ref, ys_ref):
        P = P_ref[...]                                       # (Cout, Cout) group-average

        def group_norm(y2d, gamma, beta):
            # y2d: (R, Cout) raw conv output -> normalized (Nb, HW, Cout).
            y3 = y2d.reshape(Nb, HW, Cout)
            s = jnp.sum(y3, axis=1)                          # (Nb, Cout) per-channel sum
            q = jnp.sum(y3 * y3, axis=1)                     # (Nb, Cout) per-channel sumsq
            mean = jnp.dot(s, P, preferred_element_type=f32) # per-channel group mean
            ex2 = jnp.dot(q, P, preferred_element_type=f32)  # per-channel group E[x^2]
            inv = jax.lax.rsqrt(ex2 - mean * mean + EPS)     # biased var (torch GN)
            scale = inv * gamma                              # (Nb, Cout)
            shift = beta - mean * scale
            return y3 * scale[:, None, :] + shift[:, None, :]

        # ---- shortcut branch: 1x1 conv + GroupNorm (normalized result cached) ----
        xc = xpad_ref[:, 1:H + 1, 1:W + 1, :].reshape(R, Cin)
        ysc = jnp.dot(xc, ws_ref[...], preferred_element_type=f32)
        ys_ref[...] = group_norm(ysc, gs_ref[...], bs_ref[...])

        # ---- residual conv #1: 3x3, pad 1, as 9 whole-block matmuls ----
        acc1 = jnp.zeros((R, Cout), f32)
        for kh in range(3):
            for kw in range(3):
                lhs = xpad_ref[:, kh:kh + H, kw:kw + W, :].reshape(R, Cin)
                acc1 = acc1 + jnp.dot(lhs, w1_ref[kh * 3 + kw],
                                      preferred_element_type=f32)
        y1 = jnp.maximum(group_norm(acc1, g1_ref[...], b1_ref[...]), 0.0)

        # zero-padded VMEM scratch feeding conv #2 (one zero fill + one interior store)
        yp_ref[...] = jnp.zeros(yp_ref.shape, f32)
        yp_ref[:, 1:H + 1, 1:W + 1, :] = y1.reshape(Nb, H, W, Cout)

        # ---- residual conv #2: 3x3, pad 1 ----
        acc2 = jnp.zeros((R, Cout), f32)
        for kh in range(3):
            for kw in range(3):
                lhs = yp_ref[:, kh:kh + H, kw:kw + W, :].reshape(R, Cout)
                acc2 = acc2 + jnp.dot(lhs, w2_ref[kh * 3 + kw],
                                      preferred_element_type=f32)
        y2 = group_norm(acc2, g2_ref[...], b2_ref[...])

        # ---- add + final ReLU ----
        out_ref[...] = jnp.maximum(y2 + ys_ref[...], 0.0).astype(out_ref.dtype)

    return kernel


def basic_block_forward(x_nchw, params):
    """BasicBlock forward. x_nchw: (N, Cin, H, W) float32 -> (N, Cout, H, W)."""
    N, Cin, H, W = x_nchw.shape
    w1 = params["w1"]                                        # (3, 3, Cin, Cout) HWIO
    Cout = w1.shape[-1]
    assert Cout % GROUPS == 0
    Hp, Wp = H + 2, W + 2
    HW = H * W
    f32 = jnp.float32

    # TODO(synk): only the stride=1 / projection-shortcut BasicBlock configuration is
    # implemented; stride=2 or the identity shortcut (Cin == Cout) needs a different wrapper.

    x = jnp.transpose(x_nchw, (0, 2, 3, 1)).astype(f32)                 # NHWC
    xpad = jnp.pad(x, ((0, 0), (1, 1), (1, 1), (0, 0)))                 # (N, Hp, Wp, Cin)

    w1f = w1.reshape(9, Cin, Cout).astype(f32)
    w2f = params["w2"].reshape(9, Cout, Cout).astype(f32)
    wsf = params["ws"].reshape(Cin, Cout).astype(f32)

    # Per-group averaging matrix: (s @ P)[c] = (sum of s over c's group) / (H*W*Cpg).
    Cpg = Cout // GROUPS
    ch = jnp.arange(Cout)
    P = ((ch[:, None] // Cpg) == (ch[None, :] // Cpg)).astype(f32) / float(HW * Cpg)

    Nb = _pick_nb(N, H, W, Cin, Cout)
    steps = N // Nb

    row = lambda p: p.reshape(1, Cout).astype(f32)

    def full(shape):
        nd = len(shape)
        return pl.BlockSpec(shape, lambda i: (0,) * nd)

    kernel = _make_kernel(Nb, H, W, Cin, Cout)

    out = pl.pallas_call(
        kernel,
        out_shape=jax.ShapeDtypeStruct((N, HW, Cout), f32),
        grid=(steps,),
        in_specs=[
            pl.BlockSpec((Nb, Hp, Wp, Cin), lambda i: (i, 0, 0, 0)),
            full((9, Cin, Cout)), full((1, Cout)), full((1, Cout)),
            full((9, Cout, Cout)), full((1, Cout)), full((1, Cout)),
            full((Cin, Cout)), full((1, Cout)), full((1, Cout)),
            full((Cout, Cout)),
        ],
        out_specs=pl.BlockSpec((Nb, HW, Cout), lambda i: (i, 0, 0)),
        scratch_shapes=[
            pltpu.VMEM((Nb, Hp, Wp, Cout), f32),    # zero-padded GN1+ReLU activations
            pltpu.VMEM((Nb, HW, Cout), f32),        # normalized shortcut branch
        ],
        compiler_params=pltpu.CompilerParams(
            dimension_semantics=("parallel",)),     # batch blocks are independent
    )(xpad, w1f, row(params["g1"]), row(params["b1"]),
      w2f, row(params["g2"]), row(params["b2"]),
      wsf, row(params["gs"]), row(params["bs"]), P)

    return jnp.transpose(out.reshape(N, H, W, Cout), (0, 3, 1, 2))      # back to NCHW


# ---------------- pure-JAX reference (mirrors the PyTorch module) ----------------
def _group_norm_ref(x, gamma, beta):
    N, H, W, C = x.shape
    Cpg = C // GROUPS
    xg = x.reshape(N, H, W, GROUPS, Cpg)
    mean = xg.mean(axis=(1, 2, 4), keepdims=True)
    var = xg.var(axis=(1, 2, 4), keepdims=True)
    xn = ((xg - mean) * jax.lax.rsqrt(var + EPS)).reshape(N, H, W, C)
    return xn * gamma.reshape(1, 1, 1, C) + beta.reshape(1, 1, 1, C)


def basic_block_reference(x_nchw, p):
    dn = ("NHWC", "HWIO", "NHWC")
    hi = jax.lax.Precision.HIGHEST
    x = jnp.transpose(x_nchw, (0, 2, 3, 1))
    y = jax.lax.conv_general_dilated(x, p["w1"], (1, 1), "SAME",
                                     dimension_numbers=dn, precision=hi)
    y = jnp.maximum(_group_norm_ref(y, p["g1"], p["b1"]), 0.0)
    y = jax.lax.conv_general_dilated(y, p["w2"], (1, 1), "SAME",
                                     dimension_numbers=dn, precision=hi)
    y = _group_norm_ref(y, p["g2"], p["b2"])
    s = jax.lax.conv_general_dilated(x, p["ws"], (1, 1), "VALID",
                                     dimension_numbers=dn, precision=hi)
    s = _group_norm_ref(s, p["gs"], p["bs"])
    out = jnp.maximum(y + s, 0.0)
    return jnp.transpose(out, (0, 3, 1, 2))


if __name__ == "__main__":
    # BasicBlock(in_channels=8, out_channels=16, stride=1) -> projection shortcut active.
    N, Cin, Cout, H, W = 2, 8, 16, 8, 8
    ks = jax.random.split(jax.random.PRNGKey(0), 10)
    params = {
        "w1": jax.random.normal(ks[0], (3, 3, Cin, Cout), jnp.float32) * 0.1,
        "g1": 1.0 + 0.1 * jax.random.normal(ks[1], (Cout,), jnp.float32),
        "b1": 0.1 * jax.random.normal(ks[2], (Cout,), jnp.float32),
        "w2": jax.random.normal(ks[3], (3, 3, Cout, Cout), jnp.float32) * 0.1,
        "g2": 1.0 + 0.1 * jax.random.normal(ks[4], (Cout,), jnp.float32),
        "b2": 0.1 * jax.random.normal(ks[5], (Cout,), jnp.float32),
        "ws": jax.random.normal(ks[6], (1, 1, Cin, Cout), jnp.float32) * 0.1,
        "gs": 1.0 + 0.1 * jax.random.normal(ks[7], (Cout,), jnp.float32),
        "bs": 0.1 * jax.random.normal(ks[8], (Cout,), jnp.float32),
    }
    x = jax.random.normal(ks[9], (N, Cin, H, W), jnp.float32)

    out = basic_block_forward(x, params)
    jax.block_until_ready(out)

    ref = basic_block_reference(x, params)
    assert out.shape == (N, Cout, H, W)
    assert jnp.allclose(out, ref, atol=2e-3, rtol=2e-3), \
        float(jnp.max(jnp.abs(out - ref)))
    print("KERNEL_OK")
</pallas_src>

<mosaic_0001>
module attributes {stable_mosaic.version = 11 : i64} {
  func.func @kernel(%arg0: i32, %arg1: memref<2x10x10x8xf32, #tpu.memory_space<vmem>>, %arg2: memref<9x8x16xf32, #tpu.memory_space<vmem>>, %arg3: memref<1x16xf32, #tpu.memory_space<vmem>>, %arg4: memref<1x16xf32, #tpu.memory_space<vmem>>, %arg5: memref<9x16x16xf32, #tpu.memory_space<vmem>>, %arg6: memref<1x16xf32, #tpu.memory_space<vmem>>, %arg7: memref<1x16xf32, #tpu.memory_space<vmem>>, %arg8: memref<8x16xf32, #tpu.memory_space<vmem>>, %arg9: memref<1x16xf32, #tpu.memory_space<vmem>>, %arg10: memref<1x16xf32, #tpu.memory_space<vmem>>, %arg11: memref<16x16xf32, #tpu.memory_space<vmem>>, %arg12: memref<2x64x16xf32, #tpu.memory_space<vmem>>, %arg13: memref<2x10x10x16xf32, #tpu.memory_space<vmem>>, %arg14: memref<2x64x16xf32, #tpu.memory_space<vmem>>) attributes {dimension_semantics = [#tpu.dimension_semantics<parallel>], iteration_bounds = array<i64: 1>, scalar_prefetch = 0 : i64, scratch_operands = 2 : i64, tpu.core_type = #tpu.core_type<tc>, window_params = [{transform_indices = @transform_0, window_bounds = array<i64: 2, 10, 10, 8>}, {pipeline_mode = #tpu.pipeline_mode<synchronous>, transform_indices = @transform_1, window_bounds = array<i64: 9, 8, 16>}, {pipeline_mode = #tpu.pipeline_mode<synchronous>, transform_indices = @transform_2, window_bounds = array<i64: 1, 16>}, {pipeline_mode = #tpu.pipeline_mode<synchronous>, transform_indices = @transform_3, window_bounds = array<i64: 1, 16>}, {pipeline_mode = #tpu.pipeline_mode<synchronous>, transform_indices = @transform_4, window_bounds = array<i64: 9, 16, 16>}, {pipeline_mode = #tpu.pipeline_mode<synchronous>, transform_indices = @transform_5, window_bounds = array<i64: 1, 16>}, {pipeline_mode = #tpu.pipeline_mode<synchronous>, transform_indices = @transform_6, window_bounds = array<i64: 1, 16>}, {pipeline_mode = #tpu.pipeline_mode<synchronous>, transform_indices = @transform_7, window_bounds = array<i64: 8, 16>}, {pipeline_mode = #tpu.pipeline_mode<synchronous>, transform_indices = @transform_8, window_bounds = array<i64: 1, 16>}, {pipeline_mode = #tpu.pipeline_mode<synchronous>, transform_indices = @transform_9, window_bounds = array<i64: 1, 16>}, {pipeline_mode = #tpu.pipeline_mode<synchronous>, transform_indices = @transform_10, window_bounds = array<i64: 16, 16>}, {transform_indices = @transform_11, window_bounds = array<i64: 2, 64, 16>}]} {
    %c0 = arith.constant 0 : index
    %c0_0 = arith.constant 0 : index
    %0 = vector.load %arg11[%c0, %c0_0] : memref<16x16xf32, #tpu.memory_space<vmem>>, vector<16x16xf32>
    %c0_1 = arith.constant 0 : index
    %c1 = arith.constant 1 : index
    %c1_2 = arith.constant 1 : index
    %c0_3 = arith.constant 0 : index
    %1 = vector.load %arg1[%c0_1, %c1, %c1_2, %c0_3] : memref<2x10x10x8xf32, #tpu.memory_space<vmem>>, vector<2x8x8x8xf32>
    %2 = vector.shape_cast %1 : vector<2x8x8x8xf32> to vector<128x8xf32>
    %c0_4 = arith.constant 0 : index
    %c0_5 = arith.constant 0 : index
    %3 = vector.load %arg8[%c0_4, %c0_5] : memref<8x16xf32, #tpu.memory_space<vmem>>, vector<8x16xf32>
    %cst = arith.constant dense<0.000000e+00> : vector<128x16xf32>
    %4 = tpu.matmul %2, %3, %cst {dimension_numbers = #tpu.dot_dimension_numbers<[1], [0], [0], [1], [0, 0, 1, 1], [], []>} : vector<128x8xf32>, vector<8x16xf32>, vector<128x16xf32> -> vector<128x16xf32>
    %c0_6 = arith.constant 0 : index
    %c0_7 = arith.constant 0 : index
    %5 = vector.load %arg9[%c0_6, %c0_7] : memref<1x16xf32, #tpu.memory_space<vmem>>, vector<1x16xf32>
    %c0_8 = arith.constant 0 : index
    %c0_9 = arith.constant 0 : index
    %6 = vector.load %arg10[%c0_8, %c0_9] : memref<1x16xf32, #tpu.memory_space<vmem>>, vector<1x16xf32>
    %7 = vector.shape_cast %4 : vector<128x16xf32> to vector<2x64x16xf32>
    %cst_10 = arith.constant dense<0.000000e+00> : vector<2x16xf32>
    %8 = vector.multi_reduction <add>, %7, %cst_10 [1] : vector<2x64x16xf32> to vector<2x16xf32>
    %9 = arith.mulf %7, %7 : vector<2x64x16xf32>
    %cst_11 = arith.constant dense<0.000000e+00> : vector<2x16xf32>
    %10 = vector.multi_reduction <add>, %9, %cst_11 [1] : vector<2x64x16xf32> to vector<2x16xf32>
    %cst_12 = arith.constant dense<0.000000e+00> : vector<2x16xf32>
    %11 = tpu.matmul %8, %0, %cst_12 {dimension_numbers = #tpu.dot_dimension_numbers<[1], [0], [0], [1], [0, 0, 1, 1], [], []>} : vector<2x16xf32>, vector<16x16xf32>, vector<2x16xf32> -> vector<2x16xf32>
    %cst_13 = arith.constant dense<0.000000e+00> : vector<2x16xf32>
    %12 = tpu.matmul %10, %0, %cst_13 {dimension_numbers = #tpu.dot_dimension_numbers<[1], [0], [0], [1], [0, 0, 1, 1], [], []>} : vector<2x16xf32>, vector<16x16xf32>, vector<2x16xf32> -> vector<2x16xf32>
    %13 = arith.mulf %11, %11 : vector<2x16xf32>
    %14 = arith.subf %12, %13 : vector<2x16xf32>
    %cst_14 = arith.constant 9.99999974E-6 : f32
    %15 = vector.broadcast %cst_14 : f32 to vector<2x16xf32>
    %16 = arith.addf %14, %15 : vector<2x16xf32>
    %17 = math.rsqrt %16 : vector<2x16xf32>
    %18 = vector.broadcast %5 : vector<1x16xf32> to vector<2x16xf32>
    %19 = arith.mulf %17, %18 : vector<2x16xf32>
    %20 = arith.mulf %11, %19 : vector<2x16xf32>
    %21 = vector.broadcast %6 : vector<1x16xf32> to vector<2x16xf32>
    %22 = arith.subf %21, %20 : vector<2x16xf32>
    %23 = vector.shape_cast %19 : vector<2x16xf32> to vector<2x1x16xf32>
    %24 = vector.broadcast %23 : vector<2x1x16xf32> to vector<2x64x16xf32>
    %25 = arith.mulf %7, %24 : vector<2x64x16xf32>
    %26 = vector.shape_cast %22 : vector<2x16xf32> to vector<2x1x16xf32>
    %27 = vector.broadcast %26 : vector<2x1x16xf32> to vector<2x64x16xf32>
    %28 = arith.addf %25, %27 : vector<2x64x16xf32>
    %c0_15 = arith.constant 0 : index
    %c0_16 = arith.constant 0 : index
    %c0_17 = arith.constant 0 : index
    %29 = vector.load %arg14[%c0_15, %c0_16, %c0_17] : memref<2x64x16xf32, #tpu.memory_space<vmem>>, vector<2x64x16xf32>
    tpu.vector_store %arg14[%c0_15, %c0_16, %c0_17], %28 {strides = array<i32>} : memref<2x64x16xf32, #tpu.memory_space<vmem>>, vector<2x64x16xf32>,
    %cst_18 = arith.constant 0.000000e+00 : f32
    %30 = vector.broadcast %cst_18 : f32 to vector<128x16xf32>
    %c0_19 = arith.constant 0 : index
    %c0_20 = arith.constant 0 : index
    %c0_21 = arith.constant 0 : index
    %c0_22 = arith.constant 0 : index
    %31 = vector.load %arg1[%c0_19, %c0_20, %c0_21, %c0_22] : memref<2x10x10x8xf32, #tpu.memory_space<vmem>>, vector<2x8x8x8xf32>
    %32 = vector.shape_cast %31 : vector<2x8x8x8xf32> to vector<128x8xf32>
    %c0_23 = arith.constant 0 : index
    %c0_24 = arith.constant 0 : index
    %c0_25 = arith.constant 0 : index
    %33 = vector.load %arg2[%c0_23, %c0_24, %c0_25] : memref<9x8x16xf32, #tpu.memory_space<vmem>>, vector<1x8x16xf32>
    %34 = vector.shape_cast %33 : vector<1x8x16xf32> to vector<8x16xf32>
    %cst_26 = arith.constant dense<0.000000e+00> : vector<128x16xf32>
    %35 = tpu.matmul %32, %34, %cst_26 {dimension_numbers = #tpu.dot_dimension_numbers<[1], [0], [0], [1], [0, 0, 1, 1], [], []>} : vector<128x8xf32>, vector<8x16xf32>, vector<128x16xf32> -> vector<128x16xf32>
    %36 = arith.addf %30, %35 : vector<128x16xf32>
    %c0_27 = arith.constant 0 : index
    %c0_28 = arith.constant 0 : index
    %c1_29 = arith.constant 1 : index
    %c0_30 = arith.constant 0 : index
    %37 = vector.load %arg1[%c0_27, %c0_28, %c1_29, %c0_30] : memref<2x10x10x8xf32, #tpu.memory_space<vmem>>, vector<2x8x8x8xf32>
    %38 = vector.shape_cast %37 : vector<2x8x8x8xf32> to vector<128x8xf32>
    %c1_31 = arith.constant 1 : index
    %c0_32 = arith.constant 0 : index
    %c0_33 = arith.constant 0 : index
    %39 = vector.load %arg2[%c1_31, %c0_32, %c0_33] : memref<9x8x16xf32, #tpu.memory_space<vmem>>, vector<1x8x16xf32>
    %40 = vector.shape_cast %39 : vector<1x8x16xf32> to vector<8x16xf32>
    %cst_34 = arith.constant dense<0.000000e+00> : vector<128x16xf32>
    %41 = tpu.matmul %38, %40, %cst_34 {dimension_numbers = #tpu.dot_dimension_numbers<[1], [0], [0], [1], [0, 0, 1, 1], [], []>} : vector<128x8xf32>, vector<8x16xf32>, vector<128x16xf32> -> vector<128x16xf32>
    %42 = arith.addf %36, %41 : vector<128x16xf32>
    %c0_35 = arith.constant 0 : index
    %c0_36 = arith.constant 0 : index
    %c2 = arith.constant 2 : index
    %c0_37 = arith.constant 0 : index
    %43 = vector.load %arg1[%c0_35, %c0_36, %c2, %c0_37] : memref<2x10x10x8xf32, #tpu.memory_space<vmem>>, vector<2x8x8x8xf32>
    %44 = vector.shape_cast %43 : vector<2x8x8x8xf32> to vector<128x8xf32>
    %c2_38 = arith.constant 2 : index
    %c0_39 = arith.constant 0 : index
    %c0_40 = arith.constant 0 : index
    %45 = vector.load %arg2[%c2_38, %c0_39, %c0_40] : memref<9x8x16xf32, #tpu.memory_space<vmem>>, vector<1x8x16xf32>
    %46 = vector.shape_cast %45 : vector<1x8x16xf32> to vector<8x16xf32>
    %cst_41 = arith.constant dense<0.000000e+00> : vector<128x16xf32>
    %47 = tpu.matmul %44, %46, %cst_41 {dimension_numbers = #tpu.dot_dimension_numbers<[1], [0], [0], [1], [0, 0, 1, 1], [], []>} : vector<128x8xf32>, vector<8x16xf32>, vector<128x16xf32> -> vector<128x16xf32>
    %48 = arith.addf %42, %47 : vector<128x16xf32>
    %c0_42 = arith.constant 0 : index
    %c1_43 = arith.constant 1 : index
    %c0_44 = arith.constant 0 : index
    %c0_45 = arith.constant 0 : index
    %49 = vector.load %arg1[%c0_42, %c1_43, %c0_44, %c0_45] : memref<2x10x10x8xf32, #tpu.memory_space<vmem>>, vector<2x8x8x8xf32>
    %50 = vector.shape_cast %49 : vector<2x8x8x8xf32> to vector<128x8xf32>
    %c3 = arith.constant 3 : index
    %c0_46 = arith.constant 0 : index
    %c0_47 = arith.constant 0 : index
    %51 = vector.load %arg2[%c3, %c0_46, %c0_47] : memref<9x8x16xf32, #tpu.memory_space<vmem>>, vector<1x8x16xf32>
    %52 = vector.shape_cast %51 : vector<1x8x16xf32> to vector<8x16xf32>
    %cst_48 = arith.constant dense<0.000000e+00> : vector<128x16xf32>
    %53 = tpu.matmul %50, %52, %cst_48 {dimension_numbers = #tpu.dot_dimension_numbers<[1], [0], [0], [1], [0, 0, 1, 1], [], []>} : vector<128x8xf32>, vector<8x16xf32>, vector<128x16xf32> -> vector<128x16xf32>
    %54 = arith.addf %48, %53 : vector<128x16xf32>
    %c0_49 = arith.constant 0 : index
    %c1_50 = arith.constant 1 : index
    %c1_51 = arith.constant 1 : index
    %c0_52 = arith.constant 0 : index
    %55 = vector.load %arg1[%c0_49, %c1_50, %c1_51, %c0_52] : memref<2x10x10x8xf32, #tpu.memory_space<vmem>>, vector<2x8x8x8xf32>
    %56 = vector.shape_cast %55 : vector<2x8x8x8xf32> to vector<128x8xf32>
    %c4 = arith.constant 4 : index
    %c0_53 = arith.constant 0 : index
    %c0_54 = arith.constant 0 : index
    %57 = vector.load %arg2[%c4, %c0_53, %c0_54] : memref<9x8x16xf32, #tpu.memory_space<vmem>>, vector<1x8x16xf32>
    %58 = vector.shape_cast %57 : vector<1x8x16xf32> to vector<8x16xf32>
    %cst_55 = arith.constant dense<0.000000e+00> : vector<128x16xf32>
    %59 = tpu.matmul %56, %58, %cst_55 {dimension_numbers = #tpu.dot_dimension_numbers<[1], [0], [0], [1], [0, 0, 1, 1], [], []>} : vector<128x8xf32>, vector<8x16xf32>, vector<128x16xf32> -> vector<128x16xf32>
    %60 = arith.addf %54, %59 : vector<128x16xf32>
    %c0_56 = arith.constant 0 : index
    %c1_57 = arith.constant 1 : index
    %c2_58 = arith.constant 2 : index
    %c0_59 = arith.constant 0 : index
    %61 = vector.load %arg1[%c0_56, %c1_57, %c2_58, %c0_59] : memref<2x10x10x8xf32, #tpu.memory_space<vmem>>, vector<2x8x8x8xf32>
    %62 = vector.shape_cast %61 : vector<2x8x8x8xf32> to vector<128x8xf32>
    %c5 = arith.constant 5 : index
    %c0_60 = arith.constant 0 : index
    %c0_61 = arith.constant 0 : index
    %63 = vector.load %arg2[%c5, %c0_60, %c0_61] : memref<9x8x16xf32, #tpu.memory_space<vmem>>, vector<1x8x16xf32>
    %64 = vector.shape_cast %63 : vector<1x8x16xf32> to vector<8x16xf32>
    %cst_62 = arith.constant dense<0.000000e+00> : vector<128x16xf32>
    %65 = tpu.matmul %62, %64, %cst_62 {dimension_numbers = #tpu.dot_dimension_numbers<[1], [0], [0], [1], [0, 0, 1, 1], [], []>} : vector<128x8xf32>, vector<8x16xf32>, vector<128x16xf32> -> vector<128x16xf32>
    %66 = arith.addf %60, %65 : vector<128x16xf32>
    %c0_63 = arith.constant 0 : index
    %c2_64 = arith.constant 2 : index
    %c0_65 = arith.constant 0 : index
    %c0_66 = arith.constant 0 : index
    %67 = vector.load %arg1[%c0_63, %c2_64, %c0_65, %c0_66] : memref<2x10x10x8xf32, #tpu.memory_space<vmem>>, vector<2x8x8x8xf32>
    %68 = vector.shape_cast %67 : vector<2x8x8x8xf32> to vector<128x8xf32>
    %c6 = arith.constant 6 : index
    %c0_67 = arith.constant 0 : index
    %c0_68 = arith.constant 0 : index
    %69 = vector.load %arg2[%c6, %c0_67, %c0_68] : memref<9x8x16xf32, #tpu.memory_space<vmem>>, vector<1x8x16xf32>
    %70 = vector.shape_cast %69 : vector<1x8x16xf32> to vector<8x16xf32>
    %cst_69 = arith.constant dense<0.000000e+00> : vector<128x16xf32>
    %71 = tpu.matmul %68, %70, %cst_69 {dimension_numbers = #tpu.dot_dimension_numbers<[1], [0], [0], [1], [0, 0, 1, 1], [], []>} : vector<128x8xf32>, vector<8x16xf32>, vector<128x16xf32> -> vector<128x16xf32>
    %72 = arith.addf %66, %71 : vector<128x16xf32>
    %c0_70 = arith.constant 0 : index
    %c2_71 = arith.constant 2 : index
    %c1_72 = arith.constant 1 : index
    %c0_73 = arith.constant 0 : index
    %73 = vector.load %arg1[%c0_70, %c2_71, %c1_72, %c0_73] : memref<2x10x10x8xf32, #tpu.memory_space<vmem>>, vector<2x8x8x8xf32>
    %74 = vector.shape_cast %73 : vector<2x8x8x8xf32> to vector<128x8xf32>
    %c7 = arith.constant 7 : index
    %c0_74 = arith.constant 0 : index
    %c0_75 = arith.constant 0 : index
    %75 = vector.load %arg2[%c7, %c0_74, %c0_75] : memref<9x8x16xf32, #tpu.memory_space<vmem>>, vector<1x8x16xf32>
    %76 = vector.shape_cast %75 : vector<1x8x16xf32> to vector<8x16xf32>
    %cst_76 = arith.constant dense<0.000000e+00> : vector<128x16xf32>
    %77 = tpu.matmul %74, %76, %cst_76 {dimension_numbers = #tpu.dot_dimension_numbers<[1], [0], [0], [1], [0, 0, 1, 1], [], []>} : vector<128x8xf32>, vector<8x16xf32>, vector<128x16xf32> -> vector<128x16xf32>
    %78 = arith.addf %72, %77 : vector<128x16xf32>
    %c0_77 = arith.constant 0 : index
    %c2_78 = arith.constant 2 : index
    %c2_79 = arith.constant 2 : index
    %c0_80 = arith.constant 0 : index
    %79 = vector.load %arg1[%c0_77, %c2_78, %c2_79, %c0_80] : memref<2x10x10x8xf32, #tpu.memory_space<vmem>>, vector<2x8x8x8xf32>
    %80 = vector.shape_cast %79 : vector<2x8x8x8xf32> to vector<128x8xf32>
    %c8 = arith.constant 8 : index
    %c0_81 = arith.constant 0 : index
    %c0_82 = arith.constant 0 : index
    %81 = vector.load %arg2[%c8, %c0_81, %c0_82] : memref<9x8x16xf32, #tpu.memory_space<vmem>>, vector<1x8x16xf32>
    %82 = vector.shape_cast %81 : vector<1x8x16xf32> to vector<8x16xf32>
    %cst_83 = arith.constant dense<0.000000e+00> : vector<128x16xf32>
    %83 = tpu.matmul %80, %82, %cst_83 {dimension_numbers = #tpu.dot_dimension_numbers<[1], [0], [0], [1], [0, 0, 1, 1], [], []>} : vector<128x8xf32>, vector<8x16xf32>, vector<128x16xf32> -> vector<128x16xf32>
    %84 = arith.addf %78, %83 : vector<128x16xf32>
    %c0_84 = arith.constant 0 : index
    %c0_85 = arith.constant 0 : index
    %85 = vector.load %arg3[%c0_84, %c0_85] : memref<1x16xf32, #tpu.memory_space<vmem>>, vector<1x16xf32>
    %c0_86 = arith.constant 0 : index
    %c0_87 = arith.constant 0 : index
    %86 = vector.load %arg4[%c0_86, %c0_87] : memref<1x16xf32, #tpu.memory_space<vmem>>, vector<1x16xf32>
    %87 = vector.shape_cast %84 : vector<128x16xf32> to vector<2x64x16xf32>
    %cst_88 = arith.constant dense<0.000000e+00> : vector<2x16xf32>
    %88 = vector.multi_reduction <add>, %87, %cst_88 [1] : vector<2x64x16xf32> to vector<2x16xf32>
    %89 = arith.mulf %87, %87 : vector<2x64x16xf32>
    %cst_89 = arith.constant dense<0.000000e+00> : vector<2x16xf32>
    %90 = vector.multi_reduction <add>, %89, %cst_89 [1] : vector<2x64x16xf32> to vector<2x16xf32>
    %cst_90 = arith.constant dense<0.000000e+00> : vector<2x16xf32>
    %91 = tpu.matmul %88, %0, %cst_90 {dimension_numbers = #tpu.dot_dimension_numbers<[1], [0], [0], [1], [0, 0, 1, 1], [], []>} : vector<2x16xf32>, vector<16x16xf32>, vector<2x16xf32> -> vector<2x16xf32>
    %cst_91 = arith.constant dense<0.000000e+00> : vector<2x16xf32>
    %92 = tpu.matmul %90, %0, %cst_91 {dimension_numbers = #tpu.dot_dimension_numbers<[1], [0], [0], [1], [0, 0, 1, 1], [], []>} : vector<2x16xf32>, vector<16x16xf32>, vector<2x16xf32> -> vector<2x16xf32>
    %93 = arith.mulf %91, %91 : vector<2x16xf32>
    %94 = arith.subf %92, %93 : vector<2x16xf32>
    %cst_92 = arith.constant 9.99999974E-6 : f32
    %95 = vector.broadcast %cst_92 : f32 to vector<2x16xf32>
    %96 = arith.addf %94, %95 : vector<2x16xf32>
    %97 = math.rsqrt %96 : vector<2x16xf32>
    %98 = vector.broadcast %85 : vector<1x16xf32> to vector<2x16xf32>
    %99 = arith.mulf %97, %98 : vector<2x16xf32>
    %100 = arith.mulf %91, %99 : vector<2x16xf32>
    %101 = vector.broadcast %86 : vector<1x16xf32> to vector<2x16xf32>
    %102 = arith.subf %101, %100 : vector<2x16xf32>
    %103 = vector.shape_cast %99 : vector<2x16xf32> to vector<2x1x16xf32>
    %104 = vector.broadcast %103 : vector<2x1x16xf32> to vector<2x64x16xf32>
    %105 = arith.mulf %87, %104 : vector<2x64x16xf32>
    %106 = vector.shape_cast %102 : vector<2x16xf32> to vector<2x1x16xf32>
    %107 = vector.broadcast %106 : vector<2x1x16xf32> to vector<2x64x16xf32>
    %108 = arith.addf %105, %107 : vector<2x64x16xf32>
    %cst_93 = arith.constant 0.000000e+00 : f32
    %109 = vector.broadcast %cst_93 : f32 to vector<2x64x16xf32>
    %110 = arith.maximumf %108, %109 : vector<2x64x16xf32>
    %cst_94 = arith.constant 0.000000e+00 : f32
    %111 = vector.broadcast %cst_94 : f32 to vector<2x10x10x16xf32>
    %c0_95 = arith.constant 0 : index
    %c0_96 = arith.constant 0 : index
    %c0_97 = arith.constant 0 : index
    %c0_98 = arith.constant 0 : index
    %112 = vector.load %arg13[%c0_95, %c0_96, %c0_97, %c0_98] : memref<2x10x10x16xf32, #tpu.memory_space<vmem>>, vector<2x10x10x16xf32>
    tpu.vector_store %arg13[%c0_95, %c0_96, %c0_97, %c0_98], %111 {strides = array<i32>} : memref<2x10x10x16xf32, #tpu.memory_space<vmem>>, vector<2x10x10x16xf32>,
    %113 = vector.shape_cast %110 : vector<2x64x16xf32> to vector<2x8x8x16xf32>
    %c0_99 = arith.constant 0 : index
    %c1_100 = arith.constant 1 : index
    %c1_101 = arith.constant 1 : index
    %c0_102 = arith.constant 0 : index
    %114 = vector.load %arg13[%c0_99, %c1_100, %c1_101, %c0_102] : memref<2x10x10x16xf32, #tpu.memory_space<vmem>>, vector<2x8x8x16xf32>
    tpu.vector_store %arg13[%c0_99, %c1_100, %c1_101, %c0_102], %113 {strides = array<i32>} : memref<2x10x10x16xf32, #tpu.memory_space<vmem>>, vector<2x8x8x16xf32>,
    %cst_103 = arith.constant 0.000000e+00 : f32
    %115 = vector.broadcast %cst_103 : f32 to vector<128x16xf32>
    %c0_104 = arith.constant 0 : index
    %c0_105 = arith.constant 0 : index
    %c0_106 = arith.constant 0 : index
    %c0_107 = arith.constant 0 : index
    %116 = vector.load %arg13[%c0_104, %c0_105, %c0_106, %c0_107] : memref<2x10x10x16xf32, #tpu.memory_space<vmem>>, vector<2x8x8x16xf32>
    %117 = vector.shape_cast %116 : vector<2x8x8x16xf32> to vector<128x16xf32>
    %c0_108 = arith.constant 0 : index
    %c0_109 = arith.constant 0 : index
    %c0_110 = arith.constant 0 : index
    %118 = vector.load %arg5[%c0_108, %c0_109, %c0_110] : memref<9x16x16xf32, #tpu.memory_space<vmem>>, vector<1x16x16xf32>
    %119 = vector.shape_cast %118 : vector<1x16x16xf32> to vector<16x16xf32>
    %cst_111 = arith.constant dense<0.000000e+00> : vector<128x16xf32>
    %120 = tpu.matmul %117, %119, %cst_111 {dimension_numbers = #tpu.dot_dimension_numbers<[1], [0], [0], [1], [0, 0, 1, 1], [], []>} : vector<128x16xf32>, vector<16x16xf32>, vector<128x16xf32> -> vector<128x16xf32>
    %121 = arith.addf %115, %120 : vector<128x16xf32>
    %c0_112 = arith.constant 0 : index
    %c0_113 = arith.constant 0 : index
    %c1_114 = arith.constant 1 : index
    %c0_115 = arith.constant 0 : index
    %122 = vector.load %arg13[%c0_112, %c0_113, %c1_114, %c0_115] : memref<2x10x10x16xf32, #tpu.memory_space<vmem>>, vector<2x8x8x16xf32>
    %123 = vector.shape_cast %122 : vector<2x8x8x16xf32> to vector<128x16xf32>
    %c1_116 = arith.constant 1 : index
    %c0_117 = arith.constant 0 : index
    %c0_118 = arith.constant 0 : index
    %124 = vector.load %arg5[%c1_116, %c0_117, %c0_118] : memref<9x16x16xf32, #tpu.memory_space<vmem>>, vector<1x16x16xf32>
    %125 = vector.shape_cast %124 : vector<1x16x16xf32> to vector<16x16xf32>
    %cst_119 = arith.constant dense<0.000000e+00> : vector<128x16xf32>
    %126 = tpu.matmul %123, %125, %cst_119 {dimension_numbers = #tpu.dot_dimension_numbers<[1], [0], [0], [1], [0, 0, 1, 1], [], []>} : vector<128x16xf32>, vector<16x16xf32>, vector<128x16xf32> -> vector<128x16xf32>
    %127 = arith.addf %121, %126 : vector<128x16xf32>
    %c0_120 = arith.constant 0 : index
    %c0_121 = arith.constant 0 : index
    %c2_122 = arith.constant 2 : index
    %c0_123 = arith.constant 0 : index
    %128 = vector.load %arg13[%c0_120, %c0_121, %c2_122, %c0_123] : memref<2x10x10x16xf32, #tpu.memory_space<vmem>>, vector<2x8x8x16xf32>
    %129 = vector.shape_cast %128 : vector<2x8x8x16xf32> to vector<128x16xf32>
    %c2_124 = arith.constant 2 : index
    %c0_125 = arith.constant 0 : index
    %c0_126 = arith.constant 0 : index
    %130 = vector.load %arg5[%c2_124, %c0_125, %c0_126] : memref<9x16x16xf32, #tpu.memory_space<vmem>>, vector<1x16x16xf32>
    %131 = vector.shape_cast %130 : vector<1x16x16xf32> to vector<16x16xf32>
    %cst_127 = arith.constant dense<0.000000e+00> : vector<128x16xf32>
    %132 = tpu.matmul %129, %131, %cst_127 {dimension_numbers = #tpu.dot_dimension_numbers<[1], [0], [0], [1], [0, 0, 1, 1], [], []>} : vector<128x16xf32>, vector<16x16xf32>, vector<128x16xf32> -> vector<128x16xf32>
    %133 = arith.addf %127, %132 : vector<128x16xf32>
    %c0_128 = arith.constant 0 : index
    %c1_129 = arith.constant 1 : index
    %c0_130 = arith.constant 0 : index
    %c0_131 = arith.constant 0 : index
    %134 = vector.load %arg13[%c0_128, %c1_129, %c0_130, %c0_131] : memref<2x10x10x16xf32, #tpu.memory_space<vmem>>, vector<2x8x8x16xf32>
    %135 = vector.shape_cast %134 : vector<2x8x8x16xf32> to vector<128x16xf32>
    %c3_132 = arith.constant 3 : index
    %c0_133 = arith.constant 0 : index
    %c0_134 = arith.constant 0 : index
    %136 = vector.load %arg5[%c3_132, %c0_133, %c0_134] : memref<9x16x16xf32, #tpu.memory_space<vmem>>, vector<1x16x16xf32>
    %137 = vector.shape_cast %136 : vector<1x16x16xf32> to vector<16x16xf32>
    %cst_135 = arith.constant dense<0.000000e+00> : vector<128x16xf32>
    %138 = tpu.matmul %135, %137, %cst_135 {dimension_numbers = #tpu.dot_dimension_numbers<[1], [0], [0], [1], [0, 0, 1, 1], [], []>} : vector<128x16xf32>, vector<16x16xf32>, vector<128x16xf32> -> vector<128x16xf32>
    %139 = arith.addf %133, %138 : vector<128x16xf32>
    %c0_136 = arith.constant 0 : index
    %c1_137 = arith.constant 1 : index
    %c1_138 = arith.constant 1 : index
    %c0_139 = arith.constant 0 : index
    %140 = vector.load %arg13[%c0_136, %c1_137, %c1_138, %c0_139] : memref<2x10x10x16xf32, #tpu.memory_space<vmem>>, vector<2x8x8x16xf32>
    %141 = vector.shape_cast %140 : vector<2x8x8x16xf32> to vector<128x16xf32>
    %c4_140 = arith.constant 4 : index
    %c0_141 = arith.constant 0 : index
    %c0_142 = arith.constant 0 : index
    %142 = vector.load %arg5[%c4_140, %c0_141, %c0_142] : memref<9x16x16xf32, #tpu.memory_space<vmem>>, vector<1x16x16xf32>
    %143 = vector.shape_cast %142 : vector<1x16x16xf32> to vector<16x16xf32>
    %cst_143 = arith.constant dense<0.000000e+00> : vector<128x16xf32>
    %144 = tpu.matmul %141, %143, %cst_143 {dimension_numbers = #tpu.dot_dimension_numbers<[1], [0], [0], [1], [0, 0, 1, 1], [], []>} : vector<128x16xf32>, vector<16x16xf32>, vector<128x16xf32> -> vector<128x16xf32>
    %145 = arith.addf %139, %144 : vector<128x16xf32>
    %c0_144 = arith.constant 0 : index
    %c1_145 = arith.constant 1 : index
    %c2_146 = arith.constant 2 : index
    %c0_147 = arith.constant 0 : index
    %146 = vector.load %arg13[%c0_144, %c1_145, %c2_146, %c0_147] : memref<2x10x10x16xf32, #tpu.memory_space<vmem>>, vector<2x8x8x16xf32>
    %147 = vector.shape_cast %146 : vector<2x8x8x16xf32> to vector<128x16xf32>
    %c5_148 = arith.constant 5 : index
    %c0_149 = arith.constant 0 : index
    %c0_150 = arith.constant 0 : index
    %148 = vector.load %arg5[%c5_148, %c0_149, %c0_150] : memref<9x16x16xf32, #tpu.memory_space<vmem>>, vector<1x16x16xf32>
    %149 = vector.shape_cast %148 : vector<1x16x16xf32> to vector<16x16xf32>
    %cst_151 = arith.constant dense<0.000000e+00> : vector<128x16xf32>
    %150 = tpu.matmul %147, %149, %cst_151 {dimension_numbers = #tpu.dot_dimension_numbers<[1], [0], [0], [1], [0, 0, 1, 1], [], []>} : vector<128x16xf32>, vector<16x16xf32>, vector<128x16xf32> -> vector<128x16xf32>
    %151 = arith.addf %145, %150 : vector<128x16xf32>
    %c0_152 = arith.constant 0 : index
    %c2_153 = arith.constant 2 : index
    %c0_154 = arith.constant 0 : index
    %c0_155 = arith.constant 0 : index
    %152 = vector.load %arg13[%c0_152, %c2_153, %c0_154, %c0_155] : memref<2x10x10x16xf32, #tpu.memory_space<vmem>>, vector<2x8x8x16xf32>
    %153 = vector.shape_cast %152 : vector<2x8x8x16xf32> to vector<128x16xf32>
    %c6_156 = arith.constant 6 : index
    %c0_157 = arith.constant 0 : index
    %c0_158 = arith.constant 0 : index
    %154 = vector.load %arg5[%c6_156, %c0_157, %c0_158] : memref<9x16x16xf32, #tpu.memory_space<vmem>>, vector<1x16x16xf32>
    %155 = vector.shape_cast %154 : vector<1x16x16xf32> to vector<16x16xf32>
    %cst_159 = arith.constant dense<0.000000e+00> : vector<128x16xf32>
    %156 = tpu.matmul %153, %155, %cst_159 {dimension_numbers = #tpu.dot_dimension_numbers<[1], [0], [0], [1], [0, 0, 1, 1], [], []>} : vector<128x16xf32>, vector<16x16xf32>, vector<128x16xf32> -> vector<128x16xf32>
    %157 = arith.addf %151, %156 : vector<128x16xf32>
    %c0_160 = arith.constant 0 : index
    %c2_161 = arith.constant 2 : index
    %c1_162 = arith.constant 1 : index
    %c0_163 = arith.constant 0 : index
    %158 = vector.load %arg13[%c0_160, %c2_161, %c1_162, %c0_163] : memref<2x10x10x16xf32, #tpu.memory_space<vmem>>, vector<2x8x8x16xf32>
    %159 = vector.shape_cast %158 : vector<2x8x8x16xf32> to vector<128x16xf32>
    %c7_164 = arith.constant 7 : index
    %c0_165 = arith.constant 0 : index
    %c0_166 = arith.constant 0 : index
    %160 = vector.load %arg5[%c7_164, %c0_165, %c0_166] : memref<9x16x16xf32, #tpu.memory_space<vmem>>, vector<1x16x16xf32>
    %161 = vector.shape_cast %160 : vector<1x16x16xf32> to vector<16x16xf32>
    %cst_167 = arith.constant dense<0.000000e+00> : vector<128x16xf32>
    %162 = tpu.matmul %159, %161, %cst_167 {dimension_numbers = #tpu.dot_dimension_numbers<[1], [0], [0], [1], [0, 0, 1, 1], [], []>} : vector<128x16xf32>, vector<16x16xf32>, vector<128x16xf32> -> vector<128x16xf32>
    %163 = arith.addf %157, %162 : vector<128x16xf32>
    %c0_168 = arith.constant 0 : index
    %c2_169 = arith.constant 2 : index
    %c2_170 = arith.constant 2 : index
    %c0_171 = arith.constant 0 : index
    %164 = vector.load %arg13[%c0_168, %c2_169, %c2_170, %c0_171] : memref<2x10x10x16xf32, #tpu.memory_space<vmem>>, vector<2x8x8x16xf32>
    %165 = vector.shape_cast %164 : vector<2x8x8x16xf32> to vector<128x16xf32>
    %c8_172 = arith.constant 8 : index
    %c0_173 = arith.constant 0 : index
    %c0_174 = arith.constant 0 : index
    %166 = vector.load %arg5[%c8_172, %c0_173, %c0_174] : memref<9x16x16xf32, #tpu.memory_space<vmem>>, vector<1x16x16xf32>
    %167 = vector.shape_cast %166 : vector<1x16x16xf32> to vector<16x16xf32>
    %cst_175 = arith.constant dense<0.000000e+00> : vector<128x16xf32>
    %168 = tpu.matmul %165, %167, %cst_175 {dimension_numbers = #tpu.dot_dimension_numbers<[1], [0], [0], [1], [0, 0, 1, 1], [], []>} : vector<128x16xf32>, vector<16x16xf32>, vector<128x16xf32> -> vector<128x16xf32>
    %169 = arith.addf %163, %168 : vector<128x16xf32>
    %c0_176 = arith.constant 0 : index
    %c0_177 = arith.constant 0 : index
    %170 = vector.load %arg6[%c0_176, %c0_177] : memref<1x16xf32, #tpu.memory_space<vmem>>, vector<1x16xf32>
    %c0_178 = arith.constant 0 : index
    %c0_179 = arith.constant 0 : index
    %171 = vector.load %arg7[%c0_178, %c0_179] : memref<1x16xf32, #tpu.memory_space<vmem>>, vector<1x16xf32>
    %172 = vector.shape_cast %169 : vector<128x16xf32> to vector<2x64x16xf32>
    %cst_180 = arith.constant dense<0.000000e+00> : vector<2x16xf32>
    %173 = vector.multi_reduction <add>, %172, %cst_180 [1] : vector<2x64x16xf32> to vector<2x16xf32>
    %174 = arith.mulf %172, %172 : vector<2x64x16xf32>
    %cst_181 = arith.constant dense<0.000000e+00> : vector<2x16xf32>
    %175 = vector.multi_reduction <add>, %174, %cst_181 [1] : vector<2x64x16xf32> to vector<2x16xf32>
    %cst_182 = arith.constant dense<0.000000e+00> : vector<2x16xf32>
    %176 = tpu.matmul %173, %0, %cst_182 {dimension_numbers = #tpu.dot_dimension_numbers<[1], [0], [0], [1], [0, 0, 1, 1], [], []>} : vector<2x16xf32>, vector<16x16xf32>, vector<2x16xf32> -> vector<2x16xf32>
    %cst_183 = arith.constant dense<0.000000e+00> : vector<2x16xf32>
    %177 = tpu.matmul %175, %0, %cst_183 {dimension_numbers = #tpu.dot_dimension_numbers<[1], [0], [0], [1], [0, 0, 1, 1], [], []>} : vector<2x16xf32>, vector<16x16xf32>, vector<2x16xf32> -> vector<2x16xf32>
    %178 = arith.mulf %176, %176 : vector<2x16xf32>
    %179 = arith.subf %177, %178 : vector<2x16xf32>
    %cst_184 = arith.constant 9.99999974E-6 : f32
    %180 = vector.broadcast %cst_184 : f32 to vector<2x16xf32>
    %181 = arith.addf %179, %180 : vector<2x16xf32>
    %182 = math.rsqrt %181 : vector<2x16xf32>
    %183 = vector.broadcast %170 : vector<1x16xf32> to vector<2x16xf32>
    %184 = arith.mulf %182, %183 : vector<2x16xf32>
    %185 = arith.mulf %176, %184 : vector<2x16xf32>
    %186 = vector.broadcast %171 : vector<1x16xf32> to vector<2x16xf32>
    %187 = arith.subf %186, %185 : vector<2x16xf32>
    %188 = vector.shape_cast %184 : vector<2x16xf32> to vector<2x1x16xf32>
    %189 = vector.broadcast %188 : vector<2x1x16xf32> to vector<2x64x16xf32>
    %190 = arith.mulf %172, %189 : vector<2x64x16xf32>
    %191 = vector.shape_cast %187 : vector<2x16xf32> to vector<2x1x16xf32>
    %192 = vector.broadcast %191 : vector<2x1x16xf32> to vector<2x64x16xf32>
    %193 = arith.addf %190, %192 : vector<2x64x16xf32>
    %c0_185 = arith.constant 0 : index
    %c0_186 = arith.constant 0 : index
    %c0_187 = arith.constant 0 : index
    %194 = vector.load %arg14[%c0_185, %c0_186, %c0_187] : memref<2x64x16xf32, #tpu.memory_space<vmem>>, vector<2x64x16xf32>
    %195 = arith.addf %193, %194 : vector<2x64x16xf32>
    %cst_188 = arith.constant 0.000000e+00 : f32
    %196 = vector.broadcast %cst_188 : f32 to vector<2x64x16xf32>
    %197 = arith.maximumf %195, %196 : vector<2x64x16xf32>
    %c0_189 = arith.constant 0 : index
    %c0_190 = arith.constant 0 : index
    %c0_191 = arith.constant 0 : index
    %198 = vector.load %arg12[%c0_189, %c0_190, %c0_191] : memref<2x64x16xf32, #tpu.memory_space<vmem>>, vector<2x64x16xf32>
    tpu.vector_store %arg12[%c0_189, %c0_190, %c0_191], %197 {strides = array<i32>} : memref<2x64x16xf32, #tpu.memory_space<vmem>>, vector<2x64x16xf32>,
    return
  }
  func.func @transform_0(%arg0: i32) -> (i32, i32, i32, i32) {
    %c0_i32 = arith.constant 0 : i32
    %c0_i32_0 = arith.constant 0 : i32
    %c0_i32_1 = arith.constant 0 : i32
    %c0_i32_2 = arith.constant 0 : i32
    return %arg0, %c0_i32, %c0_i32_0, %c0_i32_1 : i32, i32, i32, i32
  }
  func.func @transform_1(%arg0: i32) -> (i32, i32, i32) {
    %c0_i32 = arith.constant 0 : i32
    %c0_i32_0 = arith.constant 0 : i32
    %c0_i32_1 = arith.constant 0 : i32
    %c0_i32_2 = arith.constant 0 : i32
    return %c0_i32, %c0_i32_0, %c0_i32_1 : i32, i32, i32
  }
  func.func @transform_2(%arg0: i32) -> (i32, i32) {
    %c0_i32 = arith.constant 0 : i32
    %c0_i32_0 = arith.constant 0 : i32
    %c0_i32_1 = arith.constant 0 : i32
    return %c0_i32, %c0_i32_0 : i32, i32
  }
  func.func @transform_3(%arg0: i32) -> (i32, i32) {
    %c0_i32 = arith.constant 0 : i32
    %c0_i32_0 = arith.constant 0 : i32
    %c0_i32_1 = arith.constant 0 : i32
    return %c0_i32, %c0_i32_0 : i32, i32
  }
  func.func @transform_4(%arg0: i32) -> (i32, i32, i32) {
    %c0_i32 = arith.constant 0 : i32
    %c0_i32_0 = arith.constant 0 : i32
    %c0_i32_1 = arith.constant 0 : i32
    %c0_i32_2 = arith.constant 0 : i32
    return %c0_i32, %c0_i32_0, %c0_i32_1 : i32, i32, i32
  }
  func.func @transform_5(%arg0: i32) -> (i32, i32) {
    %c0_i32 = arith.constant 0 : i32
    %c0_i32_0 = arith.constant 0 : i32
    %c0_i32_1 = arith.constant 0 : i32
    return %c0_i32, %c0_i32_0 : i32, i32
  }
  func.func @transform_6(%arg0: i32) -> (i32, i32) {
    %c0_i32 = arith.constant 0 : i32
    %c0_i32_0 = arith.constant 0 : i32
    %c0_i32_1 = arith.constant 0 : i32
    return %c0_i32, %c0_i32_0 : i32, i32
  }
  func.func @transform_7(%arg0: i32) -> (i32, i32) {
    %c0_i32 = arith.constant 0 : i32
    %c0_i32_0 = arith.constant 0 : i32
    %c0_i32_1 = arith.constant 0 : i32
    return %c0_i32, %c0_i32_0 : i32, i32
  }
  func.func @transform_8(%arg0: i32) -> (i32, i32) {
    %c0_i32 = arith.constant 0 : i32
    %c0_i32_0 = arith.constant 0 : i32
    %c0_i32_1 = arith.constant 0 : i32
    return %c0_i32, %c0_i32_0 : i32, i32
  }
  func.func @transform_9(%arg0: i32) -> (i32, i32) {
    %c0_i32 = arith.constant 0 : i32
    %c0_i32_0 = arith.constant 0 : i32
    %c0_i32_1 = arith.constant 0 : i32
    return %c0_i32, %c0_i32_0 : i32, i32
  }
  func.func @transform_10(%arg0: i32) -> (i32, i32) {
    %c0_i32 = arith.constant 0 : i32
    %c0_i32_0 = arith.constant 0 : i32
    %c0_i32_1 = arith.constant 0 : i32
    return %c0_i32, %c0_i32_0 : i32, i32
  }
  func.func @transform_11(%arg0: i32) -> (i32, i32, i32) {
    %c0_i32 = arith.constant 0 : i32
    %c0_i32_0 = arith.constant 0 : i32
    %c0_i32_1 = arith.constant 0 : i32
    return %arg0, %c0_i32, %c0_i32_0 : i32, i32, i32
  }
}

</mosaic_0001>

<bundles_post_ra>
// kernel: tpu_custom_call.1
= control target key start
LH: loop header
LB: loop body
LE: loop exit
PB: predicated region body
PF: predicated region fallthrough
CT: control target
= control target key end

     0   :  { %vm58_vm0 = vcmask 64512   ;;  %v7228_v20 = vmov 0.0|0.0   ;;  %vm254_vm1 = vcmask 130048   ;;  %vm7229_vm2 = vmmov 0   ;;  %s9004_s7 = inlined_call_operand.vmem [shape: f32[8,16], index: 7, kind: input, shape index: {}]   ;;  %s9005_s0 = inlined_call_operand.vmem [shape: f32[2,10,10,8], index: 0, kind: input, shape index: {}]   ;;  %s9006_s10 = inlined_call_operand.vmem [shape: f32[16,16], index: 10, kind: input, shape index: {}]   ;;  %s9007_s1 = inlined_call_operand.vmem [shape: f32[9,8,16], index: 1, kind: input, shape index: {}]   ;;  %s9008_s8 = inlined_call_operand.vmem [shape: f32[1,16], index: 8, kind: input, shape index: {}]   ;;  %s9009_s9 = inlined_call_operand.vmem [shape: f32[1,16], index: 9, kind: input, shape index: {}]   ;;  %s9010_s4 = inlined_call_operand.vmem [shape: f32[9,16,16], index: 4, kind: input, shape index: {}]   ;;  %s9011_s2 = inlined_call_operand.vmem [shape: f32[1,16], index: 2, kind: input, shape index: {}]   ;;  %s9012_s3 = inlined_call_operand.vmem [shape: f32[1,16], index: 3, kind: input, shape index: {}]   ;;  %s9013_s5 = inlined_call_operand.vmem [shape: f32[1,16], index: 5, kind: input, shape index: {}]   ;;  %s9014_s6 = inlined_call_operand.vmem [shape: f32[1,16], index: 6, kind: input, shape index: {}]   ;;  %s9015_s11 = inlined_call_operand.vmem [shape: f32[2,64,16], index: 11, kind: output, shape index: {}]  }
   0x1   :  { %v57_v0 = vld [vmem:[%s9004_s7] sm:$0xff]  ;;  %v7298_v1 = vld [vmem:[%s9005_s0 + $0x11] sm:$0xff]  ;;  %v39_v18 = vld [vmem:[%s9006_s10 + $0x8] sm:$0xff]  ;;  %v9016_v21 = vmov 0.0   ;;  %vm357_vm3 = vcmask 1041409   ;;  %vm3036_vm4 = vcmask 123904  }
   0x2   :  { %v7303_v2 = vld [vmem:[%s9005_s0 + $0x21] sm:$0xff]  ;;  %6352 = vmatprep.subr.mxu0 %v57_v0  ;;  %6354 = vmatprep.mubr.msk.f32.mxu0 %vm58_vm0, %v7298_v1  ;;  %v7310_v3 = vld [vmem:[%s9005_s0 + $0x31] sm:$0xff]  ;;  %3035 = vst.msk [vmem:[#allocation2] sm:$0xff] %vm254_vm1, %v9016_v21  ;;  %3038 = vst.msk [vmem:[#allocation2 + $0x10] sm:$0xff] %vm254_vm1, %v9016_v21 }
   0x3   :  { %6353 = vmatpush3.msra.mxu0 %v57_v0  ;;  %6960 = vmatprep.subr.mxu1 %v57_v0  ;;  %v7317_v4 = vld [vmem:[%s9005_s0 + $0xd1] sm:$0xff]  ;;  %v7324_v5 = vld [vmem:[%s9005_s0 + $0x41] sm:$0xff]  ;;  %3040 = vst.msk [vmem:[#allocation2 + $0x20] sm:$0xff] %vm254_vm1, %v9016_v21  ;;  %3042 = vst.msk [vmem:[#allocation2 + $0x30] sm:$0xff] %vm254_vm1, %v9016_v21 }
   0x4   :  { %6355 = vmatmul.mubr.msk.f32.vlgmr.msra.gmra.mrb[0].mxu0 %vm58_vm0, %v7303_v2  ;;  %6961 = vmatpush3.msra.mxu1 %v57_v0  ;;  %v7331_v6 = vld [vmem:[%s9005_s0 + $0xe1] sm:$0xff]  ;;  %v7336_v7 = vld [vmem:[%s9005_s0 + $0xf1] sm:$0xff]  ;;  %3044 = vst.msk [vmem:[#allocation2 + $0x40] sm:$0xff] %vm254_vm1, %v9016_v21  ;;  %3046 = vst.msk [vmem:[#allocation2 + $0x50] sm:$0xff] %vm254_vm1, %v9016_v21 }
   0x5   :  { %6357 = vmatprep.mubr.msk.f32.mxu0 %vm58_vm0, %v7310_v3  ;;  %6369 = vmatprep.mubr.msk.f32.mxu1 %vm58_vm0, %v7317_v4  ;;  %v7341_v8 = vld [vmem:[%s9005_s0 + $0x51] sm:$0xff]  ;;  %v7350_v9 = vld [vmem:[%s9005_s0 + $0x101] sm:$0xff]  ;;  %3048 = vst.msk [vmem:[#allocation2 + $0x60] sm:$0xff] %vm254_vm1, %v9016_v21  ;;  %3050 = vst.msk [vmem:[#allocation2 + $0x70] sm:$0xff] %vm254_vm1, %v9016_v21 }
   0x6   :  { %6370 = vmatmul.mubr.msk.f32.vlgmr.msra.gmra.mrb[0].mxu1 %vm58_vm0, %v7331_v6  ;;  %v7357_v10 = vld [vmem:[%s9005_s0 + $0x111] sm:$0xff]  ;;  %v7364_v11 = vld [vmem:[%s9005_s0 + $0x61] sm:$0xff]  ;;  %6906 = vmatprep.subr.bf16.mxu1 %v7228_v20  ;;  %3052 = vst.msk [vmem:[#allocation2 + $0x80] sm:$0xff] %vm254_vm1, %v9016_v21  ;;  %3054 = vst.msk [vmem:[#allocation2 + $0x90] sm:$0xff] %vm254_vm1, %v9016_v21 }
   0x7   :  { %6372 = vmatprep.mubr.msk.f32.mxu1 %vm58_vm0, %v7336_v7  ;;  %v7369_v12 = vld [vmem:[%s9005_s0 + $0x71] sm:$0xff]  ;;  %v7378_v13 = vld [vmem:[%s9005_s0 + $0x121] sm:$0xff]  ;;  %6912 = vmatprep.subr.bf16.mxu0 %v7228_v20  ;;  %3056 = vst.msk [vmem:[#allocation2 + $0xa0] sm:$0xff] %vm254_vm1, %v9016_v21  ;;  %3058 = vst.msk [vmem:[#allocation2 + $0xb0] sm:$0xff] %vm254_vm1, %v9016_v21 }
   0x8   :  { %6358 = vmatmul.mubr.msk.f32.gmra.mrb[2].mxu0 %vm58_vm0, %v7324_v5  ;;  %v7387_v14 = vld [vmem:[%s9005_s0 + $0x81] sm:$0xff]  ;;  %v7392_v15 = vld [vmem:[%s9005_s0 + $0xb1] sm:$0xff]  ;;  %3060 = vst.msk [vmem:[#allocation2 + $0xc0] sm:$0xff] %vm254_vm1, %v9016_v21  ;;  %3062 = vst.msk [vmem:[#allocation2 + $0xd0] sm:$0xff] %vm254_vm1, %v9016_v21 }
   0x9   :  { %6360 = vmatprep.mubr.msk.f32.mxu0 %vm58_vm0, %v7341_v8  ;;  %v7403_v16 = vld [vmem:[%s9005_s0 + $0xc1] sm:$0xff]  ;;  %3064 = vst.msk [vmem:[#allocation2 + $0xe0] sm:$0xff] %vm254_vm1, %v9016_v21  ;;  %3066 = vst.msk [vmem:[#allocation2 + $0xf0] sm:$0xff] %vm254_vm1, %v9016_v21 }
   0xa   :  { %6373 = vmatmul.mubr.msk.f32.gmra.mrb[2].mxu1 %vm58_vm0, %v7350_v9  ;;  %v38_v17 = vld [vmem:[%s9006_s10] sm:$0xff]  ;;  %3068 = vst.msk [vmem:[#allocation2 + $0x100] sm:$0xff] %vm254_vm1, %v9016_v21  ;;  %3070 = vst.msk [vmem:[#allocation2 + $0x110] sm:$0xff] %vm254_vm1, %v9016_v21 }
   0xb   :  { %6375 = vmatprep.mubr.msk.f32.mxu1 %vm58_vm0, %v7357_v10  ;;  %v7413_v19 = vpack.c.bf16 %v39_v18, %v38_v17  ;;  %3072 = vst.msk [vmem:[#allocation2 + $0x120] sm:$0xff] %vm254_vm1, %v9016_v21  ;;  %3074 = vst.msk [vmem:[#allocation2 + $0x130] sm:$0xff] %vm254_vm1, %v9016_v21 }
   0xc   :  { %6361 = vmatmul.mubr.msk.f32.gmra.mrb[4].mxu0 %vm58_vm0, %v7364_v11 }
   0xd   :  { %6363 = vmatprep.mubr.msk.f32.mxu0 %vm58_vm0, %v7369_v12  ;;  %6908 = vmatpush3.bf16.msra.mxu1 %v7413_v19 }
   0xe   :  { %6376 = vmatmul.mubr.msk.f32.gmra.mrb[4].mxu1 %vm58_vm0, %v7378_v13  ;;  %6914 = vmatpush3.bf16.msra.mxu0 %v7413_v19 }
   0xf   :  { %6382 = vmatprep.mubr.msk.f32.mxu1 %vm7229_vm2, %v9016_v21  ;;  %6909 = vmatprep.subr.bf16.mxu1 %v7228_v20 }
  0x10   :  { %6364 = vmatmul.mubr.msk.f32.gmra.mrb[6].mxu0 %vm58_vm0, %v7387_v14  ;;  %6915 = vmatprep.subr.bf16.mxu0 %v7228_v20 }
  0x11   :  { %6366 = vmatprep.mubr.msk.f32.mxu0 %vm58_vm0, %v7392_v15 }
  0x14   :  { %6367 = vmatmul.mubr.msk.f32.gmra.mrb[8].mxu0 %vm58_vm0, %v7403_v16 }
  0x15   :  { %6630 = vmatprep.mubr.msk.f32.mxu0 %vm7229_vm2, %v9016_v21 }
  0xd7   :  { %v7465_v22 = vpop.f32.mrb[0].mxu0 }
  0xd8   :  { %v256_v23 = vsel %vm254_vm1, %v7465_v22, 0.0  ;;  %v298_v24 = vmul.f32 %v7465_v22, %v7465_v22  ;;  %v7471_v25 = vpop.f32.mrb[1].mxu0 }
  0xd9   :  { %v255_v26 = vsel %vm254_vm1, %v7471_v25, 0.0  ;;  %v297_v27 = vmul.f32 %v7471_v25, %v7471_v25  ;;  %v7477_v28 = vpop.f32.mrb[0].mxu1 }
  0xda   :  { %v314_v29 = vsel %vm254_vm1, %v298_v24, 0.0  ;;  %v257_v30 = vadd.f32 %v256_v23, %v255_v26  ;;  %v7480_v31 = vpop.f32.mrb[1].mxu1 }
  0xdb   :  { %v313_v32 = vsel %vm254_vm1, %v297_v27, 0.0  ;;  %v7483_v33 = vpop.f32.mrb[2].mxu0 }
  0xdc   :  { %v315_v34 = vadd.f32 %v314_v29, %v313_v32  ;;  %v7485_v35 = vpop.f32.mrb[3].mxu0  ;;  %v300_v36 = vmul.f32 %v7483_v33, %v7483_v33  ;;  %v260_v42 = vsel %vm254_vm1, %v7483_v33, 0.0  ;;  %v307_v29 = vmul.f32 %v7480_v31, %v7480_v31 }
  0xdd   :  { %v258_v37 = vsel %vm254_vm1, %v7485_v35, 0.0  ;;  %v299_v38 = vmul.f32 %v7485_v35, %v7485_v35  ;;  %v7493_v39 = vpop.f32.mrb[2].mxu1 }
  0xde   :  { %v259_v40 = vadd.f32 %v258_v37, %v257_v30  ;;  %v7495_v41 = vpop.f32.mrb[3].mxu1  ;;  %v318_v48 = vsel %vm254_vm1, %v300_v36, 0.0 }
  0xdf   :  { %v316_v43 = vsel %vm254_vm1, %v299_v38, 0.0  ;;  %v7500_v44 = vpop.f32.mrb[4].mxu0 }
  0xe0   :  { %v317_v45 = vadd.f32 %v316_v43, %v315_v34  ;;  %v7502_v46 = vpop.f32.mrb[5].mxu0  ;;  %v261_v47 = vadd.f32 %v260_v42, %v259_v40  ;;  %v302_v49 = vmul.f32 %v7500_v44, %v7500_v44  ;;  %v264_v56 = vsel %vm254_vm1, %v7500_v44, 0.0 }
  0xe1   :  { %v262_v50 = vsel %vm254_vm1, %v7502_v46, 0.0  ;;  %v301_v51 = vmul.f32 %v7502_v46, %v7502_v46  ;;  %v7511_v52 = vpop.f32.mrb[4].mxu1  ;;  %v279_v43 = vsel %vm254_vm1, %v7480_v31, 0.0 }
  0xe2   :  { %v263_v53 = vadd.f32 %v262_v50, %v261_v47  ;;  %v319_v54 = vadd.f32 %v318_v48, %v317_v45  ;;  %v7513_v55 = vpop.f32.mrb[5].mxu1  ;;  %v322_v62 = vsel %vm254_vm1, %v302_v49, 0.0  ;;  %v308_v50 = vmul.f32 %v7477_v28, %v7477_v28 }
  0xe3   :  { %v320_v57 = vsel %vm254_vm1, %v301_v51, 0.0  ;;  %v7518_v58 = vpop.f32.mrb[6].mxu0  ;;  %v337_v51 = vsel %vm254_vm1, %v307_v29, 0.0 }
  0xe4   :  { %v321_v59 = vadd.f32 %v320_v57, %v319_v54  ;;  %v7520_v60 = vpop.f32.mrb[7].mxu0  ;;  %v265_v61 = vadd.f32 %v264_v56, %v263_v53  ;;  %v304_v63 = vmul.f32 %v7518_v58, %v7518_v58  ;;  %v268_v24 = vsel %vm254_vm1, %v7518_v58, 0.0 }
  0xe5   :  { %v266_v0 = vsel %vm254_vm1, %v7520_v60, 0.0  ;;  %v303_v17 = vmul.f32 %v7520_v60, %v7520_v60  ;;  %v309_v53 = vmul.f32 %v7495_v41, %v7495_v41  ;;  %v281_v57 = vsel %vm254_vm1, %v7477_v28, 0.0 }
  0xe6   :  { %v267_v18 = vadd.f32 %v266_v0, %v265_v61  ;;  %v323_v23 = vadd.f32 %v322_v62, %v321_v59  ;;  %v326_v38 = vsel %vm254_vm1, %v304_v63, 0.0  ;;  %v283_v59 = vsel %vm254_vm1, %v7495_v41, 0.0 }
  0xe7   :  { %v324_v26 = vsel %vm254_vm1, %v303_v17, 0.0  ;;  %v7532_v27 = vpop.f32.mrb[8].mxu0  ;;  %v339_v0 = vsel %vm254_vm1, %v308_v50, 0.0  ;;  %v310_v17 = vmul.f32 %v7493_v39, %v7493_v39 }
  0xe8   :  { %v269_v30 = vadd.f32 %v268_v24, %v267_v18  ;;  %v325_v32 = vadd.f32 %v324_v26, %v323_v23  ;;  %v277_v34 = vsel %vm254_vm1, %v7532_v27, 0.0  ;;  %v306_v36 = vmul.f32 %v7532_v27, %v7532_v27  ;;  %v7540_v37 = vpop.f32.mrb[9].mxu0 }
  0xe9   :  { %v276_v40 = vsel %vm254_vm1, %v7540_v37, 0.0  ;;  %v305_v42 = vmul.f32 %v7540_v37, %v7540_v37  ;;  %v341_v18 = vsel %vm254_vm1, %v309_v53, 0.0  ;;  %v311_v23 = vmul.f32 %v7513_v55, %v7513_v55 }
  0xea   :  { %v327_v45 = vadd.f32 %v326_v38, %v325_v32  ;;  %v335_v47 = vsel %vm254_vm1, %v306_v36, 0.0  ;;  %v278_v48 = vadd.f32 %v277_v34, %v276_v40  ;;  %v270_v61 = vrot.slane %v269_v30, 4 }
  0xeb   :  { %v334_v49 = vsel %vm254_vm1, %v305_v42, 0.0  ;;  %v285_v32 = vsel %vm254_vm1, %v7493_v39, 0.0  ;;  %v287_v34 = vsel %vm254_vm1, %v7513_v55, 0.0  ;;  %v343_v42 = vsel %vm254_vm1, %v310_v17, 0.0 }
  0xec   :  { %v336_v54 = vadd.f32 %v335_v47, %v334_v49  ;;  %v280_v56 = vadd.f32 %v279_v43, %v278_v48  ;;  %v328_v24 = vrot.slane %v327_v45, 4  ;;  %v271_v36 = vadd.f32 %v270_v61, %v269_v30 }
  0xed   :  { %v312_v43 = vmul.f32 %v7511_v52, %v7511_v52  ;;  %v345_v47 = vsel %vm254_vm1, %v311_v23, 0.0 }
  0xee   :  { %v338_v62 = vadd.f32 %v337_v51, %v336_v54  ;;  %v282_v63 = vadd.f32 %v281_v57, %v280_v56  ;;  %v329_v48 = vadd.f32 %v328_v24, %v327_v45  ;;  %v289_v51 = vsel %vm254_vm1, %v7511_v52, 0.0 }
  0xef   :  { %v272_v53 = vrot.slane %v271_v36, 2  ;;  %v347_v30 = vsel %vm254_vm1, %v312_v43, 0.0 }
  0xf0   :  { %v284_v26 = vadd.f32 %v283_v59, %v282_v63  ;;  %v340_v29 = vadd.f32 %v339_v0, %v338_v62  ;;  %v330_v57 = vrot.slane %v329_v48, 2 }
  0xf1   :  { %v273_v62 = vadd.f32 %v272_v53, %v271_v36  ;;  %v5586_v36 = vld [vmem:[%s9007_s1 + $0x8] sm:$0xff]  ;;  %v5619_v53 = vld [vmem:[%s9007_s1 + $0x10] sm:$0xff] }
  0xf2   :  { %v342_v38 = vadd.f32 %v341_v18, %v340_v29  ;;  %v286_v40 = vadd.f32 %v285_v32, %v284_v26  ;;  %v331_v23 = vadd.f32 %v330_v57, %v329_v48  ;;  %v7641_v57 = vld [vmem:[%s9005_s0 + $0x20] sm:$0xff] }
  0xf3   :  { %v274_v45 = vrot.slane %v273_v62, 1 }
  0xf4   :  { %v288_v49 = vadd.f32 %v287_v34, %v286_v40  ;;  %v344_v50 = vadd.f32 %v343_v42, %v342_v38  ;;  %v332_v32 = vrot.slane %v331_v23, 1 }
  0xf5   :  { %v275_v38 = vadd.f32 %v274_v45, %v273_v62  ;;  %v7658_v62 = vld [vmem:[%s9005_s0 + $0x40] sm:$0xff] }
  0xf6   :  { %v290_v54 = vadd.f32 %v289_v51, %v288_v49  ;;  %v346_v56 = vadd.f32 %v345_v47, %v344_v50  ;;  %v333_v47 = vadd.f32 %v332_v32, %v331_v23  ;;  %v656_v50 = vld [vmem:[%s9005_s0 + $0x1] sm:$0xff]  ;;  %v648_v23 = vld [vmem:[%s9005_s0 + $0xb0] sm:$0xff] }
  0xf7   :  { %v655_v51 = vld [vmem:[%s9007_s1] sm:$0xff] }
  0xf8   :  { %v291_v59 = vrot.slane %v290_v54, 4  ;;  %v348_v61 = vadd.f32 %v347_v30, %v346_v56  ;;  %v639_v56 = vld [vmem:[%s9005_s0] sm:$0xff]  ;;  %v7636_v30 = vld [vmem:[%s9005_s0 + $0x10] sm:$0xff] }
  0xf9   :  { %v7695_v45 = vld [vmem:[%s9005_s0 + $0xc0] sm:$0xff] }
  0xfa   :  { %v292_v63 = vadd.f32 %v291_v59, %v290_v54  ;;  %v349_v0 = vrot.slane %v348_v61, 4  ;;  %v664_v54 = vld [vmem:[%s9005_s0 + $0xa1] sm:$0xff]  ;;  %v5652_v59 = vld [vmem:[%s9007_s1 + $0x18] sm:$0xff] }
  0xfb   :  { %v7722_v32 = vld [vmem:[%s9005_s0 + $0x100] sm:$0xff] }
  0xfc   :  { %v293_v17 = vrot.slane %v292_v63, 2  ;;  %v350_v18 = vadd.f32 %v349_v0, %v348_v61  ;;  %v7653_v61 = vld [vmem:[%s9005_s0 + $0x30] sm:$0xff]  ;;  %v7672_v0 = vld [vmem:[%s9005_s0 + $0x60] sm:$0xff] }
  0xfe   :  { %v294_v24 = vadd.f32 %v293_v17, %v292_v63  ;;  %v351_v26 = vrot.slane %v350_v18, 2  ;;  %v7667_v63 = vld [vmem:[%s9005_s0 + $0x50] sm:$0xff] }
  0xff   :  { %v7681_v17 = vld [vmem:[%s9005_s0 + $0x70] sm:$0xff] }
 0x100   :  { %v295_v29 = vrot.slane %v294_v24, 1  ;;  %v352_v34 = vadd.f32 %v351_v26, %v350_v18  ;;  %v647_v18 = vld [vmem:[%s9005_s0 + $0xa0] sm:$0xff] }
 0x101   :  { %v7708_v26 = vld [vmem:[%s9005_s0 + $0xe0] sm:$0xff] }
 0x102   :  { %v296_v40 = vadd.f32 %v295_v29, %v294_v24  ;;  %v353_v42 = vrot.slane %v352_v34, 1  ;;  %v7703_v24 = vld [vmem:[%s9005_s0 + $0xd0] sm:$0xff] }
 0x103   :  { %v7717_v29 = vld [vmem:[%s9005_s0 + $0xf0] sm:$0xff] }
 0x104   :  { %v358_v43 = vsel %vm357_vm3, %v296_v40, %v275_v38  ;;  %v354_v49 = vadd.f32 %v353_v42, %v352_v34  ;;  %v7731_v34 = vld [vmem:[%s9005_s0 + $0x110] sm:$0xff]  ;;  %v1060_v38 = vld [vmem:[%s9005_s0 + $0x2] sm:$0xff] }
 0x105   :  { %6383 = vmatmul.mubr.msk.f32.vlgmr.msra.gmra.mrb[6].mxu1 %vm254_vm1, %v358_v43  ;;  %v7742_v40 = vld [vmem:[%s9005_s0 + $0x12] sm:$0xff]  ;;  %v7747_v42 = vld [vmem:[%s9005_s0 + $0x22] sm:$0xff] }
 0x106   :  { %6911 = vmatpush3.bf16.msra.mxu1 %v7413_v19  ;;  %6389 = vmatprep.mubr.msk.f32.mxu1 %vm7229_vm2, %v9016_v21  ;;  %v433_v48 = vsel %vm357_vm3, %v354_v49, %v333_v47  ;;  %v5685_v43 = vld [vmem:[%s9007_s1 + $0x20] sm:$0xff]  ;;  %v7773_v49 = vld [vmem:[%s9005_s0 + $0x52] sm:$0xff]  ;;  %v5718_v21 = vld [vmem:[%s9007_s1 + $0x28] sm:$0xff] }
 0x107   :  { %6392 = vmatprep.subr.mxu1 %v5586_v36  ;;  %v7764_v47 = vld [vmem:[%s9005_s0 + $0x42] sm:$0xff] }
 0x109   :  { %6390 = vmatmul.mubr.msk.f32.vlgmr.msra.gmra.mrb[8].mxu1 %vm254_vm1, %v433_v48  ;;  %v7778_v48 = vld [vmem:[%s9005_s0 + $0x62] sm:$0xff] }
 0x10a   :  { %6393 = vmatpush3.msra.mxu1 %v5586_v36  ;;  %6394 = vmatprep.mubr.msk.f32.mxu1 %vm58_vm0, %v656_v50  ;;  %v7759_v36 = vld [vmem:[%s9005_s0 + $0x32] sm:$0xff] }
 0x10b   :  { %6418 = vmatprep.subr.mxu1 %v655_v51  ;;  %v7787_v50 = vld [vmem:[%s9005_s0 + $0x72] sm:$0xff] }
 0x10d   :  { %6395 = vmatmul.mubr.msk.f32.vlgmr.msra.gmra.mrb[10].mxu1 %vm58_vm0, %v7298_v1 }
 0x10e   :  { %6419 = vmatpush3.msra.mxu1 %v655_v51  ;;  %6397 = vmatprep.mubr.msk.f32.mxu1 %vm58_vm0, %v7303_v2  ;;  %v1068_v51 = vld [vmem:[%s9005_s0 + $0xa2] sm:$0xff] }
 0x10f   :  { %6444 = vmatprep.subr.mxu1 %v5619_v53 }
 0x111   :  { %6398 = vmatmul.mubr.msk.f32.gmra.mrb[12].mxu1 %vm58_vm0, %v7310_v3 }
 0x112   :  { %6400 = vmatprep.mubr.msk.f32.mxu1 %vm58_vm0, %v7324_v5 }
 0x115   :  { %6401 = vmatmul.mubr.msk.f32.gmra.mrb[14].mxu1 %vm58_vm0, %v7341_v8 }
 0x116   :  { %6403 = vmatprep.mubr.msk.f32.mxu1 %vm58_vm0, %v7364_v11 }
 0x119   :  { %6404 = vmatmul.mubr.msk.f32.gmra.mrb[16].mxu1 %vm58_vm0, %v7369_v12 }
 0x11a   :  { %6406 = vmatprep.mubr.msk.f32.mxu1 %vm58_vm0, %v664_v54  ;;  %v7803_v54 = vld [vmem:[%s9005_s0 + $0xc2] sm:$0xff] }
 0x11d   :  { %6407 = vmatmul.mubr.msk.f32.gmra.mrb[18].mxu1 %vm58_vm0, %v7392_v15 }
 0x11e   :  { %6409 = vmatprep.mubr.msk.f32.mxu1 %vm58_vm0, %v7403_v16 }
 0x121   :  { %6410 = vmatmul.mubr.msk.f32.gmra.mrb[20].mxu1 %vm58_vm0, %v7317_v4 }
 0x122   :  { %6412 = vmatprep.mubr.msk.f32.mxu1 %vm58_vm0, %v7331_v6 }
 0x125   :  { %6413 = vmatmul.mubr.msk.f32.gmra.mrb[22].mxu1 %vm58_vm0, %v7336_v7 }
 0x126   :  { %6415 = vmatprep.mubr.msk.f32.mxu1 %vm58_vm0, %v7350_v9 }
 0x129   :  { %6416 = vmatmul.mubr.msk.f32.gmra.mrb[24].mxu1 %vm58_vm0, %v7357_v10 }
 0x12a   :  { %6420 = vmatprep.mubr.msk.f32.mxu1 %vm58_vm0, %v639_v56  ;;  %v7812_v56 = vld [vmem:[%s9005_s0 + $0xd2] sm:$0xff] }
 0x12d   :  { %6421 = vmatmul.mubr.msk.f32.vlgmr.msra.gmra.mrb[10].mxu1 %vm58_vm0, %v7636_v30 }
 0x12e   :  { %6445 = vmatpush3.msra.mxu1 %v5619_v53  ;;  %6423 = vmatprep.mubr.msk.f32.mxu1 %vm58_vm0, %v7641_v57  ;;  %v7798_v53 = vld [vmem:[%s9005_s0 + $0xb2] sm:$0xff] }
 0x12f   :  { %6470 = vmatprep.subr.mxu1 %v5652_v59 }
 0x131   :  { %6424 = vmatmul.mubr.msk.f32.gmra.mrb[12].mxu1 %vm58_vm0, %v7653_v61 }
 0x132   :  { %6426 = vmatprep.mubr.msk.f32.mxu1 %vm58_vm0, %v7658_v62 }
 0x135   :  { %6427 = vmatmul.mubr.msk.f32.gmra.mrb[14].mxu1 %vm58_vm0, %v7667_v63 }
 0x136   :  { %6429 = vmatprep.mubr.msk.f32.mxu1 %vm58_vm0, %v7672_v0 }
 0x139   :  { %6430 = vmatmul.mubr.msk.f32.gmra.mrb[16].mxu1 %vm58_vm0, %v7681_v17 }
 0x13a   :  { %6432 = vmatprep.mubr.msk.f32.mxu1 %vm58_vm0, %v647_v18  ;;  %v7826_v18 = vld [vmem:[%s9005_s0 + $0xf2] sm:$0xff] }
 0x13d   :  { %6433 = vmatmul.mubr.msk.f32.gmra.mrb[18].mxu1 %vm58_vm0, %v648_v23 }
 0x13e   :  { %6435 = vmatprep.mubr.msk.f32.mxu1 %vm58_vm0, %v7695_v45 }
 0x141   :  { %6436 = vmatmul.mubr.msk.f32.gmra.mrb[20].mxu1 %vm58_vm0, %v7703_v24 }
 0x142   :  { %6438 = vmatprep.mubr.msk.f32.mxu1 %vm58_vm0, %v7708_v26 }
 0x145   :  { %6439 = vmatmul.mubr.msk.f32.gmra.mrb[22].mxu1 %vm58_vm0, %v7717_v29 }
 0x146   :  { %6441 = vmatprep.mubr.msk.f32.mxu1 %vm58_vm0, %v7722_v32 }
 0x149   :  { %6442 = vmatmul.mubr.msk.f32.gmra.mrb[24].mxu1 %vm58_vm0, %v7731_v34 }
 0x14a   :  { %6446 = vmatprep.mubr.msk.f32.mxu1 %vm58_vm0, %v1060_v38  ;;  %v7831_v38 = vld [vmem:[%s9005_s0 + $0x102] sm:$0xff] }
 0x14d   :  { %6447 = vmatmul.mubr.msk.f32.vlgmr.msra.gmra.mrb[10].mxu1 %vm58_vm0, %v7742_v40 }
 0x14e   :  { %6471 = vmatpush3.msra.mxu1 %v5652_v59  ;;  %6449 = vmatprep.mubr.msk.f32.mxu1 %vm58_vm0, %v7747_v42  ;;  %v7817_v59 = vld [vmem:[%s9005_s0 + $0xe2] sm:$0xff] }
 0x14f   :  { %6496 = vmatprep.subr.mxu1 %v5685_v43 }
 0x151   :  { %6450 = vmatmul.mubr.msk.f32.gmra.mrb[12].mxu1 %vm58_vm0, %v7759_v36 }
 0x152   :  { %6452 = vmatprep.mubr.msk.f32.mxu1 %vm58_vm0, %v7764_v47 }
 0x155   :  { %6453 = vmatmul.mubr.msk.f32.gmra.mrb[14].mxu1 %vm58_vm0, %v7773_v49 }
 0x156   :  { %6455 = vmatprep.mubr.msk.f32.mxu1 %vm58_vm0, %v7778_v48 }
 0x159   :  { %6456 = vmatmul.mubr.msk.f32.gmra.mrb[16].mxu1 %vm58_vm0, %v7787_v50 }
 0x15a   :  { %6458 = vmatprep.mubr.msk.f32.mxu1 %vm58_vm0, %v1068_v51  ;;  %v7840_v51 = vld [vmem:[%s9005_s0 + $0x112] sm:$0xff] }
 0x15d   :  { %6459 = vmatmul.mubr.msk.f32.gmra.mrb[18].mxu1 %vm58_vm0, %v7798_v53 }
 0x15e   :  { %6461 = vmatprep.mubr.msk.f32.mxu1 %vm58_vm0, %v7803_v54 }
 0x161   :  { %6462 = vmatmul.mubr.msk.f32.gmra.mrb[20].mxu1 %vm58_vm0, %v7812_v56 }
 0x162   :  { %6464 = vmatprep.mubr.msk.f32.mxu1 %vm58_vm0, %v7817_v59 }
 0x165   :  { %6465 = vmatmul.mubr.msk.f32.gmra.mrb[22].mxu1 %vm58_vm0, %v7826_v18 }
 0x166   :  { %6467 = vmatprep.mubr.msk.f32.mxu1 %vm58_vm0, %v7831_v38 }
 0x169   :  { %6468 = vmatmul.mubr.msk.f32.gmra.mrb[24].mxu1 %vm58_vm0, %v7840_v51 }
 0x16a   :  { %6472 = vmatprep.mubr.msk.f32.mxu1 %vm58_vm0, %v7636_v30  ;;  %v5643_v30 = vld [vmem:[%s9005_s0 + $0x80] sm:$0xff] }
 0x16d   :  { %6473 = vmatmul.mubr.msk.f32.vlgmr.msra.gmra.mrb[10].mxu1 %vm58_vm0, %v7641_v57 }
 0x16e   :  { %6497 = vmatpush3.msra.mxu1 %v5685_v43  ;;  %6475 = vmatprep.mubr.msk.f32.mxu1 %vm58_vm0, %v7653_v61  ;;  %v5751_v43 = vld [vmem:[%s9007_s1 + $0x30] sm:$0xff] }
 0x16f   :  { %6522 = vmatprep.subr.mxu1 %v5718_v21 }
 0x171   :  { %6476 = vmatmul.mubr.msk.f32.gmra.mrb[12].mxu1 %vm58_vm0, %v7658_v62 }
 0x172   :  { %6478 = vmatprep.mubr.msk.f32.mxu1 %vm58_vm0, %v7667_v63 }
 0x175   :  { %6479 = vmatmul.mubr.msk.f32.gmra.mrb[14].mxu1 %vm58_vm0, %v7672_v0 }
 0x176   :  { %6481 = vmatprep.mubr.msk.f32.mxu1 %vm58_vm0, %v7681_v17 }
 0x179   :  { %6482 = vmatmul.mubr.msk.f32.gmra.mrb[16].mxu1 %vm58_vm0, %v5643_v30 }
 0x17a   :  { %6484 = vmatprep.mubr.msk.f32.mxu1 %vm58_vm0, %v648_v23  ;;  %v7881_v23 = vld [vmem:[%s9005_s0 + $0x120] sm:$0xff] }
 0x17d   :  { %6485 = vmatmul.mubr.msk.f32.gmra.mrb[18].mxu1 %vm58_vm0, %v7695_v45 }
 0x17e   :  { %6487 = vmatprep.mubr.msk.f32.mxu1 %vm58_vm0, %v7703_v24 }
 0x181   :  { %6488 = vmatmul.mubr.msk.f32.gmra.mrb[20].mxu1 %vm58_vm0, %v7708_v26 }
 0x182   :  { %6490 = vmatprep.mubr.msk.f32.mxu1 %vm58_vm0, %v7717_v29 }
 0x185   :  { %6491 = vmatmul.mubr.msk.f32.gmra.mrb[22].mxu1 %vm58_vm0, %v7722_v32 }
 0x186   :  { %6493 = vmatprep.mubr.msk.f32.mxu1 %vm58_vm0, %v7731_v34 }
 0x189   :  { %6494 = vmatmul.mubr.msk.f32.gmra.mrb[24].mxu1 %vm58_vm0, %v7881_v23 }
 0x18a   :  { %6498 = vmatprep.mubr.msk.f32.mxu1 %vm58_vm0, %v7298_v1  ;;  %v5784_v1 = vld [vmem:[%s9007_s1 + $0x38] sm:$0xff] }
 0x18d   :  { %6499 = vmatmul.mubr.msk.f32.vlgmr.msra.gmra.mrb[10].mxu1 %vm58_vm0, %v7303_v2  ;;  %v7940_v2 = vld [vmem:[%s9005_s0 + $0x82] sm:$0xff] }
 0x18e   :  { %6523 = vmatpush3.msra.mxu1 %v5718_v21  ;;  %6501 = vmatprep.mubr.msk.f32.mxu1 %vm58_vm0, %v7310_v3  ;;  %v7961_v3 = vld [vmem:[%s9005_s0 + $0x122] sm:$0xff] }
 0x18f   :  { %6548 = vmatprep.subr.mxu1 %v5751_v43 }
 0x191   :  { %6502 = vmatmul.mubr.msk.f32.gmra.mrb[12].mxu1 %vm58_vm0, %v7324_v5  ;;  %v5742_v5 = vld [vmem:[%s9005_s0 + $0x90] sm:$0xff] }
 0x192   :  { %6504 = vmatprep.mubr.msk.f32.mxu1 %vm58_vm0, %v7341_v8 }
 0x195   :  { %6505 = vmatmul.mubr.msk.f32.gmra.mrb[14].mxu1 %vm58_vm0, %v7364_v11 }
 0x196   :  { %6507 = vmatprep.mubr.msk.f32.mxu1 %vm58_vm0, %v7369_v12 }
 0x199   :  { %6508 = vmatmul.mubr.msk.f32.gmra.mrb[16].mxu1 %vm58_vm0, %v7387_v14 }
 0x19a   :  { %6510 = vmatprep.mubr.msk.f32.mxu1 %vm58_vm0, %v7392_v15  ;;  %v529_v15 = vlaneseq }
 0x19c   :  { %v530_v21 = vshrl.u32 %v529_v15, 7 }
 0x19d   :  { %6511 = vmatmul.mubr.msk.f32.gmra.mrb[18].mxu1 %vm58_vm0, %v7403_v16 }
 0x19e   :  { %6513 = vmatprep.mubr.msk.f32.mxu1 %vm58_vm0, %v7317_v4  ;;  %v5817_v4 = vld [vmem:[%s9007_s1 + $0x40] sm:$0xff] }
 0x1a1   :  { %6514 = vmatmul.mubr.msk.f32.gmra.mrb[20].mxu1 %vm58_vm0, %v7331_v6 }
 0x1a2   :  { %6516 = vmatprep.mubr.msk.f32.mxu1 %vm58_vm0, %v7336_v7 }
 0x1a5   :  { %6517 = vmatmul.mubr.msk.f32.gmra.mrb[22].mxu1 %vm58_vm0, %v7350_v9 }
 0x1a6   :  { %6519 = vmatprep.mubr.msk.f32.mxu1 %vm58_vm0, %v7357_v10 }
 0x1a9   :  { %6520 = vmatmul.mubr.msk.f32.gmra.mrb[24].mxu1 %vm58_vm0, %v7378_v13  ;;  %v7231_v13 = vmov 1966171168  }
 0x1aa   :  { %6524 = vmatprep.mubr.msk.f32.mxu1 %vm58_vm0, %v7742_v40  ;;  %v527_v14 = vunpack.c.l.s4 %v7231_v13  ;;  %v5771_v40 = vld [vmem:[%s9005_s0 + $0x51] sm:$0xff] }
 0x1ac   :  { %v528_v16 = vunpack.c.0.s8 %v527_v14 }
 0x1ad   :  { %6525 = vmatmul.mubr.msk.f32.vlgmr.msra.gmra.mrb[10].mxu1 %vm58_vm0, %v7747_v42 }
 0x1ae   :  { %6549 = vmatpush3.msra.mxu1 %v5751_v43  ;;  %6527 = vmatprep.mubr.msk.f32.mxu1 %vm58_vm0, %v7759_v36 }
 0x1af   :  { %6574 = vmatprep.subr.mxu1 %v5784_v1 }
 0x1b1   :  { %6528 = vmatmul.mubr.msk.f32.gmra.mrb[12].mxu1 %vm58_vm0, %v7764_v47 }
 0x1b2   :  { %6530 = vmatprep.mubr.msk.f32.mxu1 %vm58_vm0, %v7773_v49 }
 0x1b5   :  { %6531 = vmatmul.mubr.msk.f32.gmra.mrb[14].mxu1 %vm58_vm0, %v7778_v48 }
 0x1b6   :  { %6533 = vmatprep.mubr.msk.f32.mxu1 %vm58_vm0, %v7787_v50 }
 0x1b9   :  { %6534 = vmatmul.mubr.msk.f32.gmra.mrb[16].mxu1 %vm58_vm0, %v7940_v2 }
 0x1ba   :  { %6536 = vmatprep.mubr.msk.f32.mxu1 %vm58_vm0, %v7798_v53  ;;  %v5772_v53 = vld [vmem:[%s9005_s0 + $0x61] sm:$0xff] }
 0x1bd   :  { %6537 = vmatmul.mubr.msk.f32.gmra.mrb[18].mxu1 %vm58_vm0, %v7803_v54 }
 0x1be   :  { %6539 = vmatprep.mubr.msk.f32.mxu1 %vm58_vm0, %v7812_v56 }
 0x1c1   :  { %6540 = vmatmul.mubr.msk.f32.gmra.mrb[20].mxu1 %vm58_vm0, %v7817_v59 }
 0x1c2   :  { %6542 = vmatprep.mubr.msk.f32.mxu1 %vm58_vm0, %v7826_v18 }
 0x1c5   :  { %6543 = vmatmul.mubr.msk.f32.gmra.mrb[22].mxu1 %vm58_vm0, %v7831_v38 }
 0x1c6   :  { %6545 = vmatprep.mubr.msk.f32.mxu1 %vm58_vm0, %v7840_v51 }
 0x1c9   :  { %6546 = vmatmul.mubr.msk.f32.gmra.mrb[24].mxu1 %vm58_vm0, %v7961_v3 }
 0x1ca   :  { %6550 = vmatprep.mubr.msk.f32.mxu1 %vm58_vm0, %v7641_v57  ;;  %v5750_v57 = vld [vmem:[%s9005_s0 + $0x130] sm:$0xff] }
 0x1cd   :  { %6551 = vmatmul.mubr.msk.f32.vlgmr.msra.gmra.mrb[10].mxu1 %vm58_vm0, %v7653_v61  ;;  %v5768_v61 = vld [vmem:[%s9005_s0 + $0x21] sm:$0xff] }
 0x1ce   :  { %6575 = vmatpush3.msra.mxu1 %v5784_v1  ;;  %6553 = vmatprep.mubr.msk.f32.mxu1 %vm58_vm0, %v7658_v62  ;;  %v5584_v62 = vld [vmem:[%s9008_s8] ss:$0 sm:$0xff] }
 0x1cf   :  { %6600 = vmatprep.subr.mxu1 %v5817_v4 }
 0x1d1   :  { %6554 = vmatmul.mubr.msk.f32.gmra.mrb[12].mxu1 %vm58_vm0, %v7667_v63  ;;  %v8009_v63 = vsub.s32 %v528_v16, %v530_v21 }
 0x1d2   :  { %6556 = vmatprep.mubr.msk.f32.mxu1 %vm58_vm0, %v7672_v0  ;;  %v5769_v0 = vld [vmem:[%s9005_s0 + $0x31] sm:$0xff] }
 0x1d5   :  { %6557 = vmatmul.mubr.msk.f32.gmra.mrb[14].mxu1 %vm58_vm0, %v7681_v17 }
 0x1d6   :  { %6559 = vmatprep.mubr.msk.f32.mxu1 %vm58_vm0, %v5643_v30 }
 0x1d8   :  { %v427_v6 = vpop.f32.mrb[6].mxu1 }
 0x1d9   :  { %v6384_v7 = vpop.f32.mrb[7].mxu1  ;;  %6560 = vmatmul.mubr.msk.f32.gmra.mrb[16].mxu1 %vm58_vm0, %v5742_v5  ;;  %v506_v8 = vmul.f32 %v427_v6, %v427_v6  ;;  %v5773_v5 = vld [vmem:[%s9005_s0 + $0x71] sm:$0xff] }
 0x1da   :  { %6562 = vmatprep.mubr.msk.f32.mxu1 %vm58_vm0, %v7695_v45  ;;  %v5770_v45 = vld [vmem:[%s9005_s0 + $0x41] sm:$0xff] }
 0x1db   :  { %v5774_v7 = vld [vmem:[%s9005_s0 + $0x81] sm:$0xff] }
 0x1dc   :  { %v502_v9 = vpop.f32.mrb[8].mxu1 }
 0x1dd   :  { %v507_v10 = vsub.f32 %v502_v9, %v506_v8  ;;  %v6391_v11 = vpop.f32.mrb[9].mxu1  ;;  %6563 = vmatmul.mubr.msk.f32.gmra.mrb[18].mxu1 %vm58_vm0, %v7703_v24 }
 0x1de   :  { %6565 = vmatprep.mubr.msk.f32.mxu1 %vm58_vm0, %v7708_v26  ;;  %v5585_v26 = vld [vmem:[%s9009_s9] ss:$0 sm:$0xff] }
 0x1df   :  { %v508_v12 = vadd.f32 1e-05, %v507_v10 }
 0x1e1   :  { %7222 = vrsqrt.f32 %v508_v12  ;;  %6566 = vmatmul.mubr.msk.f32.gmra.mrb[20].mxu1 %vm58_vm0, %v7717_v29 }
 0x1e2   :  { %6568 = vmatprep.mubr.msk.f32.mxu1 %vm58_vm0, %v7722_v32 }
 0x1e5   :  { %6569 = vmatmul.mubr.msk.f32.gmra.mrb[22].mxu1 %vm58_vm0, %v7731_v34  ;;  %v8023_v34 = vsub.s32 0, %v530_v21 }
 0x1e6   :  { %6571 = vmatprep.mubr.msk.f32.mxu1 %vm58_vm0, %v7881_v23 }
 0x1e9   :  { %6572 = vmatmul.mubr.msk.f32.gmra.mrb[24].mxu1 %vm58_vm0, %v5750_v57 }
 0x1ea   :  { %6576 = vmatprep.mubr.msk.f32.mxu1 %vm58_vm0, %v5768_v61 }
 0x1eb   :  { %v7223_v17 = vpop.eup %7222 }
 0x1ec   :  { %v516_v24 = vmul.f32 %v7223_v17, %v5584_v62 }
 0x1ed   :  { %6577 = vmatmul.mubr.msk.f32.vlgmr.msra.gmra.mrb[10].mxu1 %vm58_vm0, %v5769_v0 }
 0x1ee   :  { %v517_v29 = vmul.f32 %v516_v24, %v427_v6  ;;  %v532_v32 = vrot.slane %v516_v24, %v8009_v63  ;;  %6601 = vmatpush3.msra.mxu1 %v5817_v4  ;;  %6579 = vmatprep.mubr.msk.f32.mxu1 %vm58_vm0, %v5770_v45 }
 0x1ef   :  { %6954 = vmatprep.subr.bf16.mxu1 %v7228_v20 }
 0x1f0   :  { %v524_v30 = vsub.f32 %v5585_v26, %v517_v29  ;;  %v533_v23 = vcombine.high %v532_v32, %v532_v32  ;;  %v540_v43 = vrot.slane %v532_v32, %v8009_v63 }
 0x1f1   :  { %6580 = vmatmul.mubr.msk.f32.gmra.mrb[12].mxu1 %vm58_vm0, %v5771_v40 }
 0x1f2   :  { %v547_v1 = vrot.slane %v533_v23, %v8009_v63  ;;  %v551_v4 = vrot.slane %v540_v43, %v8023_v34  ;;  %6582 = vmatprep.mubr.msk.f32.mxu1 %vm58_vm0, %v5772_v53  ;;  %v581_v6 = vrot.slane %v524_v30, %v8009_v63  ;;  %v5779_v53 = vld [vmem:[%s9005_s0 + $0xf1] sm:$0xff] }
 0x1f4   :  { %v555_v8 = vrot.slane %v547_v1, %v8023_v34  ;;  %v558_v9 = vmul.f32 %v551_v4, %v7471_v25  ;;  %v559_v10 = vmul.f32 %v7465_v22, %v551_v4  ;;  %v560_v11 = vmul.f32 %v551_v4, %v7485_v35 }
 0x1f5   :  { %v561_v12 = vmul.f32 %v7483_v33, %v551_v4  ;;  %v562_v13 = vmul.f32 %v551_v4, %v7502_v46  ;;  %v563_v14 = vmul.f32 %v7500_v44, %v551_v4  ;;  %v564_v15 = vmul.f32 %v551_v4, %v7520_v60  ;;  %6583 = vmatmul.mubr.msk.f32.gmra.mrb[14].mxu1 %vm58_vm0, %v5773_v5  ;;  %v5775_v33 = vld [vmem:[%s9005_s0 + $0x91] sm:$0xff]  ;;  %v5776_v60 = vld [vmem:[%s9005_s0 + $0xc1] sm:$0xff] }
 0x1f6   :  { %v565_v16 = vmul.f32 %v7518_v58, %v551_v4  ;;  %v566_v21 = vmul.f32 %v555_v8, %v7540_v37  ;;  %v567_v25 = vmul.f32 %v7532_v27, %v555_v8  ;;  %v568_v22 = vmul.f32 %v555_v8, %v7480_v31  ;;  %6585 = vmatprep.mubr.msk.f32.mxu1 %vm58_vm0, %v5774_v7  ;;  %v5780_v4 = vld [vmem:[%s9005_s0 + $0x101] sm:$0xff] }
 0x1f7   :  { %v569_v35 = vmul.f32 %v7477_v28, %v555_v8  ;;  %v570_v44 = vmul.f32 %v555_v8, %v7495_v41  ;;  %v571_v46 = vmul.f32 %v7493_v39, %v555_v8  ;;  %v572_v58 = vmul.f32 %v555_v8, %v7513_v55  ;;  %v5777_v39 = vld [vmem:[%s9005_s0 + $0xd1] sm:$0xff]  ;;  %v5778_v41 = vld [vmem:[%s9005_s0 + $0xe1] sm:$0xff] }
 0x1f8   :  { %v573_v31 = vmul.f32 %v7511_v52, %v555_v8  ;;  %v582_v27 = vcombine.high %v581_v6, %v581_v6  ;;  %v589_v37 = vrot.slane %v581_v6, %v8009_v63  ;;  %v5781_v6 = vld [vmem:[%s9005_s0 + $0x111] sm:$0xff]  ;;  %v5782_v7 = vld [vmem:[%s9005_s0 + $0x121] sm:$0xff] }
 0x1f9   :  { %6586 = vmatmul.mubr.msk.f32.gmra.mrb[16].mxu1 %vm58_vm0, %v5775_v33  ;;  %v5783_v8 = vld [vmem:[%s9005_s0 + $0x131] sm:$0xff] }
 0x1fa   :  { %v596_v57 = vrot.slane %v582_v27, %v8009_v63  ;;  %v600_v28 = vrot.slane %v589_v37, %v8023_v34  ;;  %6588 = vmatprep.mubr.msk.f32.mxu1 %vm58_vm0, %v5776_v60 }
 0x1fc   :  { %v604_v52 = vrot.slane %v596_v57, %v8023_v34  ;;  %v607_v55 = vadd.f32 %v600_v28, %v558_v9  ;;  %v608_v61 = vadd.f32 %v600_v28, %v559_v10  ;;  %v609_v62 = vadd.f32 %v600_v28, %v560_v11 }
 0x1fd   :  { %v610_v0 = vadd.f32 %v600_v28, %v561_v12  ;;  %v611_v17 = vadd.f32 %v600_v28, %v562_v13  ;;  %v612_v45 = vadd.f32 %v600_v28, %v563_v14  ;;  %v613_v24 = vadd.f32 %v600_v28, %v564_v15  ;;  %6589 = vmatmul.mubr.msk.f32.gmra.mrb[18].mxu1 %vm58_vm0, %v5777_v39 }
 0x1fe   :  { %v614_v26 = vadd.f32 %v600_v28, %v565_v16  ;;  %v615_v29 = vadd.f32 %v604_v52, %v566_v21  ;;  %v616_v32 = vadd.f32 %v604_v52, %v567_v25  ;;  %v617_v40 = vadd.f32 %v604_v52, %v568_v22  ;;  %623 = vst.msk [vmem:[#allocation3] sm:$0xff] %vm254_vm1, %v607_v55 }
 0x1ff   :  { %624 = vst.msk [vmem:[#allocation3 + $0x8] sm:$0xff] %vm254_vm1, %v608_v61  ;;  %625 = vst.msk [vmem:[#allocation3 + $0x10] sm:$0xff] %vm254_vm1, %v609_v62  ;;  %6591 = vmatprep.mubr.msk.f32.mxu1 %vm58_vm0, %v5778_v41  ;;  %v618_v30 = vadd.f32 %v604_v52, %v569_v35  ;;  %v619_v23 = vadd.f32 %v604_v52, %v570_v44  ;;  %v620_v43 = vadd.f32 %v604_v52, %v571_v46 }
 0x200   :  { %v621_v1 = vadd.f32 %v604_v52, %v572_v58  ;;  %626 = vst.msk [vmem:[#allocation3 + $0x18] sm:$0xff] %vm254_vm1, %v610_v0  ;;  %627 = vst.msk [vmem:[#allocation3 + $0x20] sm:$0xff] %vm254_vm1, %v611_v17  ;;  %v622_v5 = vadd.f32 %v604_v52, %v573_v31 }
 0x201   :  { %628 = vst.msk [vmem:[#allocation3 + $0x28] sm:$0xff] %vm254_vm1, %v612_v45  ;;  %629 = vst.msk [vmem:[#allocation3 + $0x30] sm:$0xff] %vm254_vm1, %v613_v24  ;;  %6592 = vmatmul.mubr.msk.f32.gmra.mrb[20].mxu1 %vm58_vm0, %v5779_v53 }
 0x202   :  { %630 = vst.msk [vmem:[#allocation3 + $0x38] sm:$0xff] %vm254_vm1, %v614_v26  ;;  %631 = vst.msk [vmem:[#allocation3 + $0x40] sm:$0xff] %vm254_vm1, %v615_v29  ;;  %6594 = vmatprep.mubr.msk.f32.mxu1 %vm58_vm0, %v5780_v4 }
 0x203   :  { %632 = vst.msk [vmem:[#allocation3 + $0x48] sm:$0xff] %vm254_vm1, %v616_v32  ;;  %633 = vst.msk [vmem:[#allocation3 + $0x50] sm:$0xff] %vm254_vm1, %v617_v40 }
 0x204   :  { %634 = vst.msk [vmem:[#allocation3 + $0x58] sm:$0xff] %vm254_vm1, %v618_v30  ;;  %635 = vst.msk [vmem:[#allocation3 + $0x60] sm:$0xff] %vm254_vm1, %v619_v23 }
 0x205   :  { %636 = vst.msk [vmem:[#allocation3 + $0x68] sm:$0xff] %vm254_vm1, %v620_v43  ;;  %637 = vst.msk [vmem:[#allocation3 + $0x70] sm:$0xff] %vm254_vm1, %v621_v1  ;;  %6595 = vmatmul.mubr.msk.f32.gmra.mrb[22].mxu1 %vm58_vm0, %v5781_v6 }
 0x206   :  { %638 = vst.msk [vmem:[#allocation3 + $0x78] sm:$0xff] %vm254_vm1, %v622_v5  ;;  %6597 = vmatprep.mubr.msk.f32.mxu1 %vm58_vm0, %v5782_v7 }
 0x209   :  { %6598 = vmatmul.mubr.msk.f32.gmra.mrb[24].mxu1 %vm58_vm0, %v5783_v8 }
 0x20a   :  { %6602 = vmatprep.mubr.msk.f32.mxu1 %vm58_vm0, %v7747_v42  ;;  %v5808_v42 = vld [vmem:[%s9005_s0 + $0x92] sm:$0xff] }
 0x20d   :  { %6603 = vmatmul.mubr.msk.f32.vlgmr.msra.gmra.mrb[10].mxu1 %vm58_vm0, %v7759_v36  ;;  %v9018_v36 = vmov 0.0  }
 0x20e   :  { %6605 = vmatprep.mubr.msk.f32.mxu1 %vm58_vm0, %v7764_v47  ;;  %6956 = vmatpush3.bf16.msra.mxu1 %v7413_v19  ;;  %3037 = vst.msk [vmem:[#allocation2 + $0x8] sm:$0x3] %vm3036_vm4, %v9018_v36  ;;  %3039 = vst.msk [vmem:[#allocation2 + $0x18] sm:$0x3] %vm3036_vm4, %v9018_v36 }
 0x20f   :  { %6957 = vmatprep.subr.bf16.mxu1 %v7228_v20  ;;  %v5816_v20 = vld [vmem:[%s9005_s0 + $0x132] sm:$0xff]  ;;  %3041 = vst.msk [vmem:[#allocation2 + $0x28] sm:$0x3] %vm3036_vm4, %v9018_v36  ;;  %3043 = vst.msk [vmem:[#allocation2 + $0x38] sm:$0x3] %vm3036_vm4, %v9018_v36 }
 0x210   :  { %3045 = vst.msk [vmem:[#allocation2 + $0x48] sm:$0x3] %vm3036_vm4, %v9018_v36  ;;  %3047 = vst.msk [vmem:[#allocation2 + $0x58] sm:$0x3] %vm3036_vm4, %v9018_v36 }
 0x211   :  { %6606 = vmatmul.mubr.msk.f32.gmra.mrb[12].mxu1 %vm58_vm0, %v7773_v49  ;;  %3049 = vst.msk [vmem:[#allocation2 + $0x68] sm:$0x3] %vm3036_vm4, %v9018_v36  ;;  %3051 = vst.msk [vmem:[#allocation2 + $0x78] sm:$0x3] %vm3036_vm4, %v9018_v36 }
 0x212   :  { %6608 = vmatprep.mubr.msk.f32.mxu1 %vm58_vm0, %v7778_v48  ;;  %3053 = vst.msk [vmem:[#allocation2 + $0x88] sm:$0x3] %vm3036_vm4, %v9018_v36  ;;  %3055 = vst.msk [vmem:[#allocation2 + $0x98] sm:$0x3] %vm3036_vm4, %v9018_v36 }
 0x213   :  { %3057 = vst.msk [vmem:[#allocation2 + $0xa8] sm:$0x3] %vm3036_vm4, %v9018_v36  ;;  %3059 = vst.msk [vmem:[#allocation2 + $0xb8] sm:$0x3] %vm3036_vm4, %v9018_v36 }
 0x214   :  { %3061 = vst.msk [vmem:[#allocation2 + $0xc8] sm:$0x3] %vm3036_vm4, %v9018_v36  ;;  %3063 = vst.msk [vmem:[#allocation2 + $0xd8] sm:$0x3] %vm3036_vm4, %v9018_v36 }
 0x215   :  { %6609 = vmatmul.mubr.msk.f32.gmra.mrb[14].mxu1 %vm58_vm0, %v7787_v50  ;;  %3065 = vst.msk [vmem:[#allocation2 + $0xe8] sm:$0x3] %vm3036_vm4, %v9018_v36  ;;  %3067 = vst.msk [vmem:[#allocation2 + $0xf8] sm:$0x3] %vm3036_vm4, %v9018_v36 }
 0x216   :  { %6611 = vmatprep.mubr.msk.f32.mxu1 %vm58_vm0, %v7940_v2  ;;  %3069 = vst.msk [vmem:[#allocation2 + $0x108] sm:$0x3] %vm3036_vm4, %v9018_v36  ;;  %3071 = vst.msk [vmem:[#allocation2 + $0x118] sm:$0x3] %vm3036_vm4, %v9018_v36 }
 0x217   :  { %3073 = vst.msk [vmem:[#allocation2 + $0x128] sm:$0x3] %vm3036_vm4, %v9018_v36  ;;  %3075 = vst.msk [vmem:[#allocation2 + $0x138] sm:$0x3] %vm3036_vm4, %v9018_v36 }
 0x219   :  { %6612 = vmatmul.mubr.msk.f32.gmra.mrb[16].mxu1 %vm58_vm0, %v5808_v42 }
 0x21a   :  { %6614 = vmatprep.mubr.msk.f32.mxu1 %vm58_vm0, %v7803_v54 }
 0x21d   :  { %6615 = vmatmul.mubr.msk.f32.gmra.mrb[18].mxu1 %vm58_vm0, %v7812_v56 }
 0x21e   :  { %6617 = vmatprep.mubr.msk.f32.mxu1 %vm58_vm0, %v7817_v59 }
 0x221   :  { %6618 = vmatmul.mubr.msk.f32.gmra.mrb[20].mxu1 %vm58_vm0, %v7826_v18 }
 0x222   :  { %6620 = vmatprep.mubr.msk.f32.mxu1 %vm58_vm0, %v7831_v38 }
 0x225   :  { %6621 = vmatmul.mubr.msk.f32.gmra.mrb[22].mxu1 %vm58_vm0, %v7840_v51 }
 0x226   :  { %6623 = vmatprep.mubr.msk.f32.mxu1 %vm58_vm0, %v7961_v3 }
 0x229   :  { %6624 = vmatmul.mubr.msk.f32.gmra.mrb[24].mxu1 %vm58_vm0, %v5816_v20 }
 0x22a   :  { %6896 = vmatprep.mubr.msk.f32.mxu1 %vm7229_vm2, %v9018_v36 }
 0x2e0   :  { %v8160_v47 = vpop.f32.mrb[10].mxu1 }
 0x2e1   :  { %v2653_v49 = vsel %vm254_vm1, %v8160_v47, 0.0  ;;  %v2695_v48 = vmul.f32 %v8160_v47, %v8160_v47  ;;  %v8166_v50 = vpop.f32.mrb[11].mxu1 }
 0x2e2   :  { %v2652_v54 = vsel %vm254_vm1, %v8166_v50, 0.0  ;;  %v2694_v56 = vmul.f32 %v8166_v50, %v8166_v50 }
 0x2e3   :  { %v2711_v59 = vsel %vm254_vm1, %v2695_v48, 0.0  ;;  %v2654_v18 = vadd.f32 %v2653_v49, %v2652_v54 }
 0x2e4   :  { %v2710_v38 = vsel %vm254_vm1, %v2694_v56, 0.0  ;;  %v8174_v51 = vpop.f32.mrb[12].mxu1 }
 0x2e5   :  { %v2712_v2 = vadd.f32 %v2711_v59, %v2710_v38  ;;  %v8176_v3 = vpop.f32.mrb[13].mxu1  ;;  %v2697_v9 = vmul.f32 %v8174_v51, %v8174_v51  ;;  %v2657_v13 = vsel %vm254_vm1, %v8174_v51, 0.0 }
 0x2e6   :  { %v2655_v10 = vsel %vm254_vm1, %v8176_v3, 0.0  ;;  %v2696_v11 = vmul.f32 %v8176_v3, %v8176_v3 }
 0x2e7   :  { %v2656_v12 = vadd.f32 %v2655_v10, %v2654_v18  ;;  %v2715_v22 = vsel %vm254_vm1, %v2697_v9, 0.0 }
 0x2e8   :  { %v2713_v14 = vsel %vm254_vm1, %v2696_v11, 0.0  ;;  %v8187_v15 = vpop.f32.mrb[14].mxu1 }
 0x2e9   :  { %v2714_v16 = vadd.f32 %v2713_v14, %v2712_v2  ;;  %v8189_v21 = vpop.f32.mrb[15].mxu1  ;;  %v2658_v25 = vadd.f32 %v2657_v13, %v2656_v12  ;;  %v2699_v33 = vmul.f32 %v8187_v15, %v8187_v15  ;;  %v2661_v60 = vsel %vm254_vm1, %v8187_v15, 0.0 }
 0x2ea   :  { %v2659_v35 = vsel %vm254_vm1, %v8189_v21, 0.0  ;;  %v2698_v44 = vmul.f32 %v8189_v21, %v8189_v21 }
 0x2eb   :  { %v2660_v46 = vadd.f32 %v2659_v35, %v2658_v25  ;;  %v2716_v58 = vadd.f32 %v2715_v22, %v2714_v16  ;;  %v2719_v39 = vsel %vm254_vm1, %v2699_v33, 0.0 }
 0x2ec   :  { %v2717_v31 = vsel %vm254_vm1, %v2698_v44, 0.0  ;;  %v8201_v27 = vpop.f32.mrb[16].mxu1 }
 0x2ed   :  { %v2718_v37 = vadd.f32 %v2717_v31, %v2716_v58  ;;  %v8203_v57 = vpop.f32.mrb[17].mxu1  ;;  %v2662_v28 = vadd.f32 %v2661_v60, %v2660_v46  ;;  %v2701_v41 = vmul.f32 %v8201_v27, %v8201_v27  ;;  %v2665_v0 = vsel %vm254_vm1, %v8201_v27, 0.0 }
 0x2ee   :  { %v2663_v52 = vsel %vm254_vm1, %v8203_v57, 0.0  ;;  %v2700_v55 = vmul.f32 %v8203_v57, %v8203_v57 }
 0x2ef   :  { %v2664_v61 = vadd.f32 %v2663_v52, %v2662_v28  ;;  %v2720_v62 = vadd.f32 %v2719_v39, %v2718_v37  ;;  %v2723_v53 = vsel %vm254_vm1, %v2701_v41, 0.0 }
 0x2f0   :  { %v2721_v17 = vsel %vm254_vm1, %v2700_v55, 0.0  ;;  %v8215_v45 = vpop.f32.mrb[18].mxu1 }
 0x2f1   :  { %v2666_v24 = vadd.f32 %v2665_v0, %v2664_v61  ;;  %v2722_v26 = vadd.f32 %v2721_v17, %v2720_v62  ;;  %v2674_v29 = vsel %vm254_vm1, %v8215_v45, 0.0  ;;  %v2703_v32 = vmul.f32 %v8215_v45, %v8215_v45  ;;  %v8221_v40 = vpop.f32.mrb[19].mxu1 }
 0x2f2   :  { %v2673_v30 = vsel %vm254_vm1, %v8221_v40, 0.0  ;;  %v2702_v23 = vmul.f32 %v8221_v40, %v8221_v40 }
 0x2f3   :  { %v2724_v43 = vadd.f32 %v2723_v53, %v2722_v26  ;;  %v2732_v1 = vsel %vm254_vm1, %v2703_v32, 0.0  ;;  %v2675_v4 = vadd.f32 %v2674_v29, %v2673_v30  ;;  %v2667_v59 = vrot.slane %v2666_v24, 4 }
 0x2f4   :  { %v2731_v5 = vsel %vm254_vm1, %v2702_v23, 0.0  ;;  %v8230_v6 = vpop.f32.mrb[20].mxu1 }
 0x2f5   :  { %v2733_v7 = vadd.f32 %v2732_v1, %v2731_v5  ;;  %v8232_v8 = vpop.f32.mrb[21].mxu1  ;;  %v2705_v42 = vmul.f32 %v8230_v6, %v8230_v6  ;;  %v2678_v18 = vsel %vm254_vm1, %v8230_v6, 0.0  ;;  %v2725_v14 = vrot.slane %v2724_v43, 4 }
 0x2f6   :  { %v2676_v20 = vsel %vm254_vm1, %v8232_v8, 0.0  ;;  %v2704_v49 = vmul.f32 %v8232_v8, %v8232_v8  ;;  %v2668_v35 = vadd.f32 %v2667_v59, %v2666_v24 }
 0x2f7   :  { %v2677_v48 = vadd.f32 %v2676_v20, %v2675_v4  ;;  %v2736_v38 = vsel %vm254_vm1, %v2705_v42, 0.0  ;;  %v2726_v41 = vadd.f32 %v2725_v14, %v2724_v43  ;;  %v5839_v14 = vld [vmem:[%s9010_s4 + $0x18] sm:$0xff] }
 0x2f8   :  { %v2734_v54 = vsel %vm254_vm1, %v2704_v49, 0.0  ;;  %v8241_v56 = vpop.f32.mrb[22].mxu1  ;;  %v2669_v17 = vrot.slane %v2668_v35, 2 }
 0x2f9   :  { %v2735_v2 = vadd.f32 %v2734_v54, %v2733_v7  ;;  %v8246_v9 = vpop.f32.mrb[23].mxu1  ;;  %v2707_v10 = vmul.f32 %v8241_v56, %v8241_v56  ;;  %v2679_v11 = vadd.f32 %v2678_v18, %v2677_v48  ;;  %v2682_v44 = vsel %vm254_vm1, %v8241_v56, 0.0 }
 0x2fa   :  { %v2680_v12 = vsel %vm254_vm1, %v8246_v9, 0.0  ;;  %v2706_v13 = vmul.f32 %v8246_v9, %v8246_v9  ;;  %v2727_v29 = vrot.slane %v2726_v41, 2  ;;  %v2670_v23 = vadd.f32 %v2669_v17, %v2668_v35 }
 0x2fb   :  { %v2737_v16 = vadd.f32 %v2736_v38, %v2735_v2  ;;  %v2681_v25 = vadd.f32 %v2680_v12, %v2679_v11  ;;  %v2740_v46 = vsel %vm254_vm1, %v2707_v10, 0.0 }
 0x2fc   :  { %v2738_v22 = vsel %vm254_vm1, %v2706_v13, 0.0  ;;  %v8255_v33 = vpop.f32.mrb[24].mxu1  ;;  %v2728_v43 = vadd.f32 %v2727_v29, %v2726_v41  ;;  %v2671_v42 = vrot.slane %v2670_v23, 1  ;;  %v5838_v13 = vld [vmem:[%s9010_s4 + $0x10] sm:$0xff] }
 0x2fd   :  { %v2739_v58 = vadd.f32 %v2738_v22, %v2737_v16  ;;  %v8260_v60 = vpop.f32.mrb[25].mxu1  ;;  %v2709_v31 = vmul.f32 %v8255_v33, %v8255_v33  ;;  %v2683_v37 = vadd.f32 %v2682_v44, %v2681_v25  ;;  %v2686_v62 = vsel %vm254_vm1, %v8255_v33, 0.0  ;;  %v3109_v16 = vld [vmem:[%s9010_s4] sm:$0xff]  ;;  %v3110_v22 = vld [vmem:[%s9010_s4 + $0x8] sm:$0xff] }
 0x2fe   :  { %v2684_v28 = vsel %vm254_vm1, %v8260_v60, 0.0  ;;  %v2708_v39 = vmul.f32 %v8260_v60, %v8260_v60  ;;  %v2729_v49 = vrot.slane %v2728_v43, 1  ;;  %v2672_v18 = vadd.f32 %v2671_v42, %v2670_v23  ;;  %v3111_v44 = vld [vmem:[#allocation2 + $0x1] sm:$0xff] }
 0x2ff   :  { %v2741_v52 = vadd.f32 %v2740_v46, %v2739_v58  ;;  %v2685_v55 = vadd.f32 %v2684_v28, %v2683_v37  ;;  %v2744_v24 = vsel %vm254_vm1, %v2709_v31, 0.0  ;;  %v6918_v25 = vpack.c.bf16 %v5839_v14, %v5838_v13 }
 0x300   :  { %v2742_v61 = vsel %vm254_vm1, %v2708_v39, 0.0  ;;  %v2730_v2 = vadd.f32 %v2729_v49, %v2728_v43  ;;  %v8331_v35 = vpack.c.bf16 %v3110_v22, %v3109_v16 }
 0x301   :  { %v2743_v0 = vadd.f32 %v2742_v61, %v2741_v52  ;;  %v2687_v26 = vadd.f32 %v2686_v62, %v2685_v55  ;;  %v5836_v52 = vld [vmem:[%s9011_s2] ss:$0 sm:$0xff] }
 0x302   :  { %v5837_v62 = vld [vmem:[%s9012_s3] ss:$0 sm:$0xff] }
 0x303   :  { %v2745_v32 = vadd.f32 %v2744_v24, %v2743_v0  ;;  %v2688_v53 = vrot.slane %v2687_v26, 4 }
 0x305   :  { %v2746_v30 = vrot.slane %v2745_v32, 4  ;;  %v2689_v1 = vadd.f32 %v2688_v53, %v2687_v26 }
 0x307   :  { %v2747_v4 = vadd.f32 %v2746_v30, %v2745_v32  ;;  %v2690_v5 = vrot.slane %v2689_v1, 2 }
 0x309   :  { %v2748_v7 = vrot.slane %v2747_v4, 2  ;;  %v2691_v20 = vadd.f32 %v2690_v5, %v2689_v1 }
 0x30b   :  { %v2749_v48 = vadd.f32 %v2748_v7, %v2747_v4  ;;  %v2692_v54 = vrot.slane %v2691_v20, 1 }
 0x30d   :  { %v2750_v59 = vrot.slane %v2749_v48, 1  ;;  %v2693_v38 = vadd.f32 %v2692_v54, %v2691_v20 }
 0x30f   :  { %v2751_v10 = vadd.f32 %v2750_v59, %v2749_v48  ;;  %v2754_v11 = vsel %vm357_vm3, %v2693_v38, %v2672_v18 }
 0x310   :  { %6631 = vmatmul.mubr.msk.f32.vlgmr.msra.gmra.mrb[10].mxu0 %vm254_vm1, %v2754_v11 }
 0x311   :  { %v2829_v12 = vsel %vm357_vm3, %v2751_v10, %v2730_v2  ;;  %6917 = vmatpush3.bf16.msra.mxu0 %v7413_v19  ;;  %6637 = vmatprep.mubr.msk.f32.mxu0 %vm7229_vm2, %v9018_v36 }
 0x312   :  { %6919 = vmatprep.subr.bf16.mxu0 %v6918_v25 }
 0x314   :  { %6638 = vmatmul.mubr.msk.f32.vlgmr.msra.gmra.mrb[12].mxu0 %vm254_vm1, %v2829_v12 }
 0x315   :  { %6921 = vmatpush3.bf16.msra.mxu0 %v6918_v25  ;;  %6644 = vmatprep.mubr.msk.f32.mxu0 %vm254_vm1, %v3111_v44 }
 0x316   :  { %6923 = vmatprep.subr.bf16.mxu0 %v8331_v35 }
 0x3e3   :  { %v2823_v46 = vpop.f32.mrb[10].mxu0 }
 0x3e4   :  { %v6632_v58 = vpop.f32.mrb[11].mxu0  ;;  %v2902_v31 = vmul.f32 %v2823_v46, %v2823_v46 }
 0x3e7   :  { %v2898_v37 = vpop.f32.mrb[12].mxu0 }
 0x3e8   :  { %v2903_v28 = vsub.f32 %v2898_v37, %v2902_v31  ;;  %v6639_v39 = vpop.f32.mrb[13].mxu0 }
 0x3ea   :  { %v2904_v41 = vadd.f32 1e-05, %v2903_v28 }
 0x3ec   :  { %7224 = vrsqrt.f32 %v2904_v41 }
 0x3f6   :  { %v7225_v55 = vpop.eup %7224 }
 0x3f7   :  { %v2912_v61 = vmul.f32 %v7225_v55, %v5836_v52 }
 0x3f9   :  { %v2913_v0 = vmul.f32 %v2912_v61, %v2823_v46  ;;  %v2928_v17 = vrot.slane %v2912_v61, %v8009_v63 }
 0x3fb   :  { %v2920_v24 = vsub.f32 %v5837_v62, %v2913_v0  ;;  %v2929_v26 = vcombine.high %v2928_v17, %v2928_v17  ;;  %v2936_v29 = vrot.slane %v2928_v17, %v8009_v63 }
 0x3fd   :  { %v2943_v32 = vrot.slane %v2929_v26, %v8009_v63  ;;  %v2947_v53 = vrot.slane %v2936_v29, %v8023_v34  ;;  %v2977_v30 = vrot.slane %v2920_v24, %v8009_v63 }
 0x3ff   :  { %v2951_v23 = vrot.slane %v2943_v32, %v8023_v34  ;;  %v2978_v1 = vcombine.high %v2977_v30, %v2977_v30  ;;  %v2985_v4 = vrot.slane %v2977_v30, %v8009_v63  ;;  %v2954_v43 = vmul.f32 %v2947_v53, %v8166_v50 }
 0x400   :  { %v2955_v5 = vmul.f32 %v8160_v47, %v2947_v53  ;;  %v2956_v7 = vmul.f32 %v2947_v53, %v8176_v3  ;;  %v2957_v42 = vmul.f32 %v8174_v51, %v2947_v53  ;;  %v2958_v20 = vmul.f32 %v2947_v53, %v8189_v21 }
 0x401   :  { %v2992_v49 = vrot.slane %v2978_v1, %v8009_v63  ;;  %v2996_v48 = vrot.slane %v2985_v4, %v8023_v34  ;;  %v2959_v54 = vmul.f32 %v8187_v15, %v2947_v53  ;;  %v2960_v59 = vmul.f32 %v2947_v53, %v8203_v57 }
 0x402   :  { %v2962_v18 = vmul.f32 %v2951_v23, %v8221_v40  ;;  %v2963_v50 = vmul.f32 %v8215_v45, %v2951_v23  ;;  %v2964_v47 = vmul.f32 %v2951_v23, %v8232_v8  ;;  %v2965_v3 = vmul.f32 %v8230_v6, %v2951_v23 }
 0x403   :  { %v3000_v51 = vrot.slane %v2992_v49, %v8023_v34  ;;  %v3003_v38 = vadd.f32 %v2996_v48, %v2954_v43  ;;  %v3004_v21 = vadd.f32 %v2996_v48, %v2955_v5  ;;  %v3005_v2 = vadd.f32 %v2996_v48, %v2956_v7  ;;  %v3119_v43 = vld [vmem:[#allocation2 + $0xa1] sm:$0xff] }
 0x404   :  { %v3006_v10 = vadd.f32 %v2996_v48, %v2957_v42  ;;  %v3007_v11 = vadd.f32 %v2996_v48, %v2958_v20  ;;  %v3008_v12 = vadd.f32 %v2996_v48, %v2959_v54  ;;  %v3009_v13 = vadd.f32 %v2996_v48, %v2960_v59  ;;  %v3093_v59 = vld [vmem:[#allocation2] sm:$0xff] }
 0x405   :  { %v3019_v15 = vmax.f32 %v3003_v38, 0.0  ;;  %v3020_v14 = vmax.f32 %v3004_v21, 0.0  ;;  %v3021_v57 = vmax.f32 %v3005_v2, 0.0  ;;  %v3011_v16 = vadd.f32 %v3000_v51, %v2962_v18 }
 0x406   :  { %v3022_v40 = vmax.f32 %v3006_v10, 0.0  ;;  %v3023_v25 = vmax.f32 %v3007_v11, 0.0  ;;  %v3024_v45 = vmax.f32 %v3008_v12, 0.0  ;;  %v3025_v22 = vmax.f32 %v3009_v13, 0.0  ;;  %v3101_v12 = vld [vmem:[#allocation2 + $0xa0] sm:$0xff] }
 0x407   :  { %3077 = vst.msk [vmem:[#allocation2 + $0x11] sm:$0xff] %vm254_vm1, %v3019_v15  ;;  %3078 = vst.msk [vmem:[#allocation2 + $0x21] sm:$0xff] %vm254_vm1, %v3020_v14  ;;  %v3027_v6 = vmax.f32 %v3011_v16, 0.0  ;;  %v3012_v8 = vadd.f32 %v3000_v51, %v2963_v50  ;;  %v3013_v44 = vadd.f32 %v3000_v51, %v2964_v47  ;;  %v3014_v46 = vadd.f32 %v3000_v51, %v2965_v3  ;;  %v5890_v50 = vld [vmem:[%s9010_s4 + $0x30] sm:$0xff]  ;;  %v5891_v47 = vld [vmem:[%s9010_s4 + $0x38] sm:$0xff] }
 0x408   :  { %3079 = vst.msk [vmem:[#allocation2 + $0x31] sm:$0xff] %vm254_vm1, %v3021_v57  ;;  %3080 = vst.msk [vmem:[#allocation2 + $0x41] sm:$0xff] %vm254_vm1, %v3022_v40  ;;  %v2966_v58 = vmul.f32 %v2951_v23, %v8246_v9  ;;  %v2967_v31 = vmul.f32 %v8241_v56, %v2951_v23  ;;  %v2968_v37 = vmul.f32 %v2951_v23, %v8260_v60  ;;  %v5872_v9 = vld [vmem:[%s9010_s4 + $0x20] sm:$0xff]  ;;  %v5873_v56 = vld [vmem:[%s9010_s4 + $0x28] sm:$0xff] }
 0x409   :  { %3081 = vst.msk [vmem:[#allocation2 + $0x51] sm:$0xff] %vm254_vm1, %v3023_v25  ;;  %3082 = vst.msk [vmem:[#allocation2 + $0x61] sm:$0xff] %vm254_vm1, %v3024_v45  ;;  %v2961_v28 = vmul.f32 %v8201_v27, %v2947_v53  ;;  %v3028_v39 = vmax.f32 %v3012_v8, 0.0  ;;  %v3029_v41 = vmax.f32 %v3013_v44, 0.0  ;;  %v3030_v52 = vmax.f32 %v3014_v46, 0.0  ;;  %v3516_v45 = vld [vmem:[#allocation2 + $0x2] sm:$0xff] }
 0x40a   :  { %3083 = vst.msk [vmem:[#allocation2 + $0x71] sm:$0xff] %vm254_vm1, %v3025_v22  ;;  %3085 = vst.msk [vmem:[#allocation2 + $0xb1] sm:$0xff] %vm254_vm1, %v3027_v6  ;;  %v2969_v55 = vmul.f32 %v8255_v33, %v2951_v23  ;;  %v3015_v61 = vadd.f32 %v3000_v51, %v2966_v58  ;;  %v3016_v62 = vadd.f32 %v3000_v51, %v2967_v31  ;;  %v5908_v6 = vld [vmem:[%s9010_s4 + $0x40] sm:$0xff]  ;;  %v5909_v8 = vld [vmem:[%s9010_s4 + $0x48] sm:$0xff] }
 0x40b   :  { %v3017_v0 = vadd.f32 %v3000_v51, %v2968_v37  ;;  %v3010_v60 = vadd.f32 %v2996_v48, %v2961_v28  ;;  %3086 = vst.msk [vmem:[#allocation2 + $0xc1] sm:$0xff] %vm254_vm1, %v3028_v39  ;;  %3087 = vst.msk [vmem:[#allocation2 + $0xd1] sm:$0xff] %vm254_vm1, %v3029_v41  ;;  %v6926_v29 = vpack.c.bf16 %v5873_v56, %v5872_v9  ;;  %v3524_v41 = vld [vmem:[#allocation2 + $0xa2] sm:$0xff] }
 0x40c   :  { %3088 = vst.msk [vmem:[#allocation2 + $0xe1] sm:$0xff] %vm254_vm1, %v3030_v52  ;;  %v3018_v27 = vadd.f32 %v3000_v51, %v2969_v55  ;;  %v3031_v33 = vmax.f32 %v3015_v61, 0.0  ;;  %v3032_v17 = vmax.f32 %v3016_v62, 0.0  ;;  %v6930_v3 = vpack.c.bf16 %v5891_v47, %v5890_v50  ;;  %v5963_v50 = vld [vmem:[%s9010_s4 + $0x78] sm:$0xff] }
 0x40d   :  { %v3033_v24 = vmax.f32 %v3017_v0, 0.0  ;;  %v3026_v26 = vmax.f32 %v3010_v60, 0.0  ;;  %v6934_v44 = vpack.c.bf16 %v5909_v8, %v5908_v6 }
 0x40e   :  { %v3034_v32 = vmax.f32 %v3018_v27, 0.0  ;;  %v8384_v53 = vld [vmem:[#allocation2 + $0x11] sm:$0xff]  ;;  %v8386_v30 = vld [vmem:[#allocation2 + $0x21] sm:$0xff]  ;;  %3089 = vst.msk [vmem:[#allocation2 + $0xf1] sm:$0xff] %vm254_vm1, %v3031_v33  ;;  %3090 = vst.msk [vmem:[#allocation2 + $0x101] sm:$0xff] %vm254_vm1, %v3032_v17 }
 0x40f   :  { %3091 = vst.msk [vmem:[#allocation2 + $0x111] sm:$0xff] %vm254_vm1, %v3033_v24  ;;  %3084 = vst.msk [vmem:[#allocation2 + $0x81] sm:$0xff] %vm254_vm1, %v3026_v26  ;;  %6645 = vmatmul.mubr.msk.f32.vlgmr.msra.gmra.mrb[14].mxu0 %vm254_vm1, %v8384_v53  ;;  %v8398_v23 = vld [vmem:[#allocation2 + $0x31] sm:$0xff]  ;;  %v8402_v1 = vld [vmem:[#allocation2 + $0x41] sm:$0xff] }
 0x410   :  { %3092 = vst.msk [vmem:[#allocation2 + $0x121] sm:$0xff] %vm254_vm1, %v3034_v32  ;;  %6925 = vmatpush3.bf16.msra.mxu0 %v8331_v35  ;;  %6647 = vmatprep.mubr.msk.f32.mxu0 %vm254_vm1, %v8386_v30  ;;  %v8406_v4 = vld [vmem:[#allocation2 + $0x51] sm:$0xff]  ;;  %v8410_v35 = vld [vmem:[#allocation2 + $0x61] sm:$0xff] }
 0x411   :  { %6927 = vmatprep.subr.bf16.mxu0 %v6926_v29  ;;  %v8414_v5 = vld [vmem:[#allocation2 + $0x71] sm:$0xff]  ;;  %v8458_v38 = vld [vmem:[#allocation2 + $0x20] sm:$0xff]  ;;  %v5945_v32 = vld [vmem:[%s9010_s4 + $0x68] sm:$0xff] }
 0x412   :  { %v8419_v7 = vld [vmem:[#allocation2 + $0xb1] sm:$0xff]  ;;  %v8423_v42 = vld [vmem:[#allocation2 + $0xc1] sm:$0xff] }
 0x413   :  { %6648 = vmatmul.mubr.msk.f32.gmra.mrb[16].mxu0 %vm254_vm1, %v8398_v23  ;;  %v8427_v20 = vld [vmem:[#allocation2 + $0xd1] sm:$0xff]  ;;  %v8431_v49 = vld [vmem:[#allocation2 + $0xe1] sm:$0xff] }
 0x414   :  { %6650 = vmatprep.mubr.msk.f32.mxu0 %vm254_vm1, %v8402_v1  ;;  %v8454_v51 = vld [vmem:[#allocation2 + $0x10] sm:$0xff]  ;;  %v8466_v2 = vld [vmem:[#allocation2 + $0x40] sm:$0xff]  ;;  %v5927_v33 = vld [vmem:[%s9010_s4 + $0x58] sm:$0xff] }
 0x415   :  { %v8435_v48 = vld [vmem:[#allocation2 + $0xf1] sm:$0xff]  ;;  %v8439_v54 = vld [vmem:[#allocation2 + $0x101] sm:$0xff] }
 0x416   :  { %v8443_v18 = vld [vmem:[#allocation2 + $0x111] sm:$0xff]  ;;  %v8474_v11 = vld [vmem:[#allocation2 + $0x60] sm:$0xff] }
 0x417   :  { %6651 = vmatmul.mubr.msk.f32.gmra.mrb[18].mxu0 %vm254_vm1, %v8406_v4  ;;  %v8462_v21 = vld [vmem:[#allocation2 + $0x30] sm:$0xff]  ;;  %v8487_v14 = vld [vmem:[#allocation2 + $0xc0] sm:$0xff] }
 0x418   :  { %6653 = vmatprep.mubr.msk.f32.mxu0 %vm254_vm1, %v8410_v35  ;;  %v8470_v10 = vld [vmem:[#allocation2 + $0x50] sm:$0xff]  ;;  %v8495_v16 = vld [vmem:[#allocation2 + $0xe0] sm:$0xff] }
 0x419   :  { %v8478_v13 = vld [vmem:[#allocation2 + $0x70] sm:$0xff]  ;;  %v8503_v25 = vld [vmem:[#allocation2 + $0x100] sm:$0xff] }
 0x41a   :  { %v8483_v15 = vld [vmem:[#allocation2 + $0xb0] sm:$0xff]  ;;  %v8522_v58 = vld [vmem:[#allocation2 + $0x22] sm:$0xff] }
 0x41b   :  { %6654 = vmatmul.mubr.msk.f32.gmra.mrb[20].mxu0 %vm254_vm1, %v8414_v5  ;;  %v8491_v57 = vld [vmem:[#allocation2 + $0xd0] sm:$0xff]  ;;  %v8530_v37 = vld [vmem:[#allocation2 + $0x42] sm:$0xff] }
 0x41c   :  { %6656 = vmatprep.mubr.msk.f32.mxu0 %vm254_vm1, %v3119_v43  ;;  %v8499_v40 = vld [vmem:[#allocation2 + $0xf0] sm:$0xff]  ;;  %v8538_v39 = vld [vmem:[#allocation2 + $0x62] sm:$0xff] }
 0x41d   :  { %v8507_v22 = vld [vmem:[#allocation2 + $0x110] sm:$0xff]  ;;  %v8551_v61 = vld [vmem:[#allocation2 + $0xc2] sm:$0xff] }
 0x41e   :  { %v8518_v46 = vld [vmem:[#allocation2 + $0x12] sm:$0xff]  ;;  %v8559_v0 = vld [vmem:[#allocation2 + $0xe2] sm:$0xff] }
 0x41f   :  { %6657 = vmatmul.mubr.msk.f32.gmra.mrb[22].mxu0 %vm254_vm1, %v8419_v7  ;;  %v8526_v31 = vld [vmem:[#allocation2 + $0x32] sm:$0xff]  ;;  %v8567_v56 = vld [vmem:[#allocation2 + $0x102] sm:$0xff] }
 0x420   :  { %6659 = vmatprep.mubr.msk.f32.mxu0 %vm254_vm1, %v8423_v42  ;;  %v8534_v28 = vld [vmem:[#allocation2 + $0x52] sm:$0xff]  ;;  %v8595_v24 = vld [vmem:[#allocation2 + $0x80] sm:$0xff] }
 0x421   :  { %v8542_v52 = vld [vmem:[#allocation2 + $0x72] sm:$0xff]  ;;  %v8613_v26 = vld [vmem:[#allocation2 + $0x120] sm:$0xff] }
 0x422   :  { %v8547_v55 = vld [vmem:[#allocation2 + $0xb2] sm:$0xff] }
 0x423   :  { %6660 = vmatmul.mubr.msk.f32.gmra.mrb[24].mxu0 %vm254_vm1, %v8427_v20  ;;  %v8555_v62 = vld [vmem:[#allocation2 + $0xd2] sm:$0xff] }
 0x424   :  { %6662 = vmatprep.mubr.msk.f32.mxu0 %vm254_vm1, %v8431_v49  ;;  %v8563_v9 = vld [vmem:[#allocation2 + $0xf2] sm:$0xff] }
 0x425   :  { %v8571_v60 = vld [vmem:[#allocation2 + $0x112] sm:$0xff] }
 0x426   :  { %v5926_v27 = vld [vmem:[%s9010_s4 + $0x50] sm:$0xff] }
 0x427   :  { %6663 = vmatmul.mubr.msk.f32.gmra.mrb[26].mxu0 %vm254_vm1, %v8435_v48  ;;  %v6938_v17 = vpack.c.bf16 %v5927_v33, %v5926_v27 }
 0x428   :  { %6665 = vmatprep.mubr.msk.f32.mxu0 %vm254_vm1, %v8439_v54 }
 0x42b   :  { %6666 = vmatmul.mubr.msk.f32.gmra.mrb[28].mxu0 %vm254_vm1, %v8443_v18 }
 0x42c   :  { %6672 = vmatprep.mubr.msk.f32.mxu0 %vm254_vm1, %v3093_v59  ;;  %v8655_v59 = vld [vmem:[#allocation2 + $0x121] sm:$0xff] }
 0x42f   :  { %6673 = vmatmul.mubr.msk.f32.vlgmr.msra.gmra.mrb[14].mxu0 %vm254_vm1, %v8454_v51 }
 0x430   :  { %6929 = vmatpush3.bf16.msra.mxu0 %v6926_v29  ;;  %6675 = vmatprep.mubr.msk.f32.mxu0 %vm254_vm1, %v8458_v38  ;;  %v5944_v29 = vld [vmem:[%s9010_s4 + $0x60] sm:$0xff] }
 0x431   :  { %6931 = vmatprep.subr.bf16.mxu0 %v6930_v3  ;;  %v6942_v43 = vpack.c.bf16 %v5945_v32, %v5944_v29 }
 0x433   :  { %6676 = vmatmul.mubr.msk.f32.gmra.mrb[16].mxu0 %vm254_vm1, %v8462_v21 }
 0x434   :  { %6678 = vmatprep.mubr.msk.f32.mxu0 %vm254_vm1, %v8466_v2 }
 0x437   :  { %6679 = vmatmul.mubr.msk.f32.gmra.mrb[18].mxu0 %vm254_vm1, %v8470_v10 }
 0x438   :  { %6681 = vmatprep.mubr.msk.f32.mxu0 %vm254_vm1, %v8474_v11 }
 0x43b   :  { %6682 = vmatmul.mubr.msk.f32.gmra.mrb[20].mxu0 %vm254_vm1, %v8478_v13 }
 0x43c   :  { %6684 = vmatprep.mubr.msk.f32.mxu0 %vm254_vm1, %v3101_v12  ;;  %v5980_v12 = vld [vmem:[%s9010_s4 + $0x80] sm:$0xff] }
 0x43f   :  { %6685 = vmatmul.mubr.msk.f32.gmra.mrb[22].mxu0 %vm254_vm1, %v8483_v15 }
 0x440   :  { %6687 = vmatprep.mubr.msk.f32.mxu0 %vm254_vm1, %v8487_v14 }
 0x443   :  { %6688 = vmatmul.mubr.msk.f32.gmra.mrb[24].mxu0 %vm254_vm1, %v8491_v57 }
 0x444   :  { %6690 = vmatprep.mubr.msk.f32.mxu0 %vm254_vm1, %v8495_v16 }
 0x447   :  { %6691 = vmatmul.mubr.msk.f32.gmra.mrb[26].mxu0 %vm254_vm1, %v8499_v40 }
 0x448   :  { %6693 = vmatprep.mubr.msk.f32.mxu0 %vm254_vm1, %v8503_v25 }
 0x44b   :  { %6694 = vmatmul.mubr.msk.f32.gmra.mrb[28].mxu0 %vm254_vm1, %v8507_v22 }
 0x44c   :  { %6700 = vmatprep.mubr.msk.f32.mxu0 %vm254_vm1, %v3516_v45 }
 0x44f   :  { %6701 = vmatmul.mubr.msk.f32.vlgmr.msra.gmra.mrb[14].mxu0 %vm254_vm1, %v8518_v46 }
 0x450   :  { %6933 = vmatpush3.bf16.msra.mxu0 %v6930_v3  ;;  %6703 = vmatprep.mubr.msk.f32.mxu0 %vm254_vm1, %v8522_v58  ;;  %v4207_v3 = vld [vmem:[#allocation2 + $0x82] sm:$0xff] }
 0x451   :  { %6935 = vmatprep.subr.bf16.mxu0 %v6934_v44 }
 0x453   :  { %6704 = vmatmul.mubr.msk.f32.gmra.mrb[16].mxu0 %vm254_vm1, %v8526_v31 }
 0x454   :  { %6706 = vmatprep.mubr.msk.f32.mxu0 %vm254_vm1, %v8530_v37 }
 0x457   :  { %6707 = vmatmul.mubr.msk.f32.gmra.mrb[18].mxu0 %vm254_vm1, %v8534_v28 }
 0x458   :  { %6709 = vmatprep.mubr.msk.f32.mxu0 %vm254_vm1, %v8538_v39 }
 0x45b   :  { %6710 = vmatmul.mubr.msk.f32.gmra.mrb[20].mxu0 %vm254_vm1, %v8542_v52 }
 0x45c   :  { %6712 = vmatprep.mubr.msk.f32.mxu0 %vm254_vm1, %v3524_v41 }
 0x45f   :  { %6713 = vmatmul.mubr.msk.f32.gmra.mrb[22].mxu0 %vm254_vm1, %v8547_v55 }
 0x460   :  { %6715 = vmatprep.mubr.msk.f32.mxu0 %vm254_vm1, %v8551_v61 }
 0x463   :  { %6716 = vmatmul.mubr.msk.f32.gmra.mrb[24].mxu0 %vm254_vm1, %v8555_v62 }
 0x464   :  { %6718 = vmatprep.mubr.msk.f32.mxu0 %vm254_vm1, %v8559_v0 }
 0x467   :  { %6719 = vmatmul.mubr.msk.f32.gmra.mrb[26].mxu0 %vm254_vm1, %v8563_v9 }
 0x468   :  { %6721 = vmatprep.mubr.msk.f32.mxu0 %vm254_vm1, %v8567_v56 }
 0x46b   :  { %6722 = vmatmul.mubr.msk.f32.gmra.mrb[28].mxu0 %vm254_vm1, %v8571_v60 }
 0x46c   :  { %6728 = vmatprep.mubr.msk.f32.mxu0 %vm254_vm1, %v8454_v51  ;;  %v4215_v51 = vld [vmem:[#allocation2 + $0x122] sm:$0xff] }
 0x46f   :  { %6729 = vmatmul.mubr.msk.f32.vlgmr.msra.gmra.mrb[14].mxu0 %vm254_vm1, %v8458_v38 }
 0x470   :  { %6937 = vmatpush3.bf16.msra.mxu0 %v6934_v44  ;;  %6731 = vmatprep.mubr.msk.f32.mxu0 %vm254_vm1, %v8462_v21 }
 0x471   :  { %6939 = vmatprep.subr.bf16.mxu0 %v6938_v17 }
 0x473   :  { %6732 = vmatmul.mubr.msk.f32.gmra.mrb[16].mxu0 %vm254_vm1, %v8466_v2 }
 0x474   :  { %6734 = vmatprep.mubr.msk.f32.mxu0 %vm254_vm1, %v8470_v10 }
 0x477   :  { %6735 = vmatmul.mubr.msk.f32.gmra.mrb[18].mxu0 %vm254_vm1, %v8474_v11 }
 0x478   :  { %6737 = vmatprep.mubr.msk.f32.mxu0 %vm254_vm1, %v8478_v13 }
 0x47b   :  { %6738 = vmatmul.mubr.msk.f32.gmra.mrb[20].mxu0 %vm254_vm1, %v8595_v24 }
 0x47c   :  { %6740 = vmatprep.mubr.msk.f32.mxu0 %vm254_vm1, %v8483_v15  ;;  %v5981_v15 = vld [vmem:[%s9010_s4 + $0x88] sm:$0xff] }
 0x47d   :  { %v6950_v45 = vpack.c.bf16 %v5981_v15, %v5980_v12 }
 0x47f   :  { %6741 = vmatmul.mubr.msk.f32.gmra.mrb[22].mxu0 %vm254_vm1, %v8487_v14 }
 0x480   :  { %6743 = vmatprep.mubr.msk.f32.mxu0 %vm254_vm1, %v8491_v57 }
 0x483   :  { %6744 = vmatmul.mubr.msk.f32.gmra.mrb[24].mxu0 %vm254_vm1, %v8495_v16 }
 0x484   :  { %6746 = vmatprep.mubr.msk.f32.mxu0 %vm254_vm1, %v8499_v40 }
 0x487   :  { %6747 = vmatmul.mubr.msk.f32.gmra.mrb[26].mxu0 %vm254_vm1, %v8503_v25 }
 0x488   :  { %6749 = vmatprep.mubr.msk.f32.mxu0 %vm254_vm1, %v8507_v22 }
 0x48b   :  { %6750 = vmatmul.mubr.msk.f32.gmra.mrb[28].mxu0 %vm254_vm1, %v8613_v26 }
 0x48c   :  { %6756 = vmatprep.mubr.msk.f32.mxu0 %vm254_vm1, %v8384_v53  ;;  %v8637_v53 = vld [vmem:[#allocation2 + $0x81] sm:$0xff] }
 0x48f   :  { %6757 = vmatmul.mubr.msk.f32.vlgmr.msra.gmra.mrb[14].mxu0 %vm254_vm1, %v8386_v30 }
 0x490   :  { %6941 = vmatpush3.bf16.msra.mxu0 %v6938_v17  ;;  %6759 = vmatprep.mubr.msk.f32.mxu0 %vm254_vm1, %v8398_v23 }
 0x491   :  { %6943 = vmatprep.subr.bf16.mxu0 %v6942_v43 }
 0x493   :  { %6760 = vmatmul.mubr.msk.f32.gmra.mrb[16].mxu0 %vm254_vm1, %v8402_v1 }
 0x494   :  { %6762 = vmatprep.mubr.msk.f32.mxu0 %vm254_vm1, %v8406_v4 }
 0x497   :  { %6763 = vmatmul.mubr.msk.f32.gmra.mrb[18].mxu0 %vm254_vm1, %v8410_v35 }
 0x498   :  { %6765 = vmatprep.mubr.msk.f32.mxu0 %vm254_vm1, %v8414_v5 }
 0x49b   :  { %6766 = vmatmul.mubr.msk.f32.gmra.mrb[20].mxu0 %vm254_vm1, %v8637_v53 }
 0x49c   :  { %6768 = vmatprep.mubr.msk.f32.mxu0 %vm254_vm1, %v8419_v7  ;;  %v5962_v7 = vld [vmem:[%s9010_s4 + $0x70] sm:$0xff] }
 0x49d   :  { %v6946_v47 = vpack.c.bf16 %v5963_v50, %v5962_v7 }
 0x49f   :  { %6769 = vmatmul.mubr.msk.f32.gmra.mrb[22].mxu0 %vm254_vm1, %v8423_v42 }
 0x4a0   :  { %6771 = vmatprep.mubr.msk.f32.mxu0 %vm254_vm1, %v8427_v20 }
 0x4a3   :  { %6772 = vmatmul.mubr.msk.f32.gmra.mrb[24].mxu0 %vm254_vm1, %v8431_v49 }
 0x4a4   :  { %6774 = vmatprep.mubr.msk.f32.mxu0 %vm254_vm1, %v8435_v48 }
 0x4a7   :  { %6775 = vmatmul.mubr.msk.f32.gmra.mrb[26].mxu0 %vm254_vm1, %v8439_v54 }
 0x4a8   :  { %6777 = vmatprep.mubr.msk.f32.mxu0 %vm254_vm1, %v8443_v18 }
 0x4ab   :  { %6778 = vmatmul.mubr.msk.f32.gmra.mrb[28].mxu0 %vm254_vm1, %v8655_v59 }
 0x4ac   :  { %6784 = vmatprep.mubr.msk.f32.mxu0 %vm254_vm1, %v8518_v46 }
 0x4af   :  { %6785 = vmatmul.mubr.msk.f32.vlgmr.msra.gmra.mrb[14].mxu0 %vm254_vm1, %v8522_v58 }
 0x4b0   :  { %6945 = vmatpush3.bf16.msra.mxu0 %v6942_v43  ;;  %6787 = vmatprep.mubr.msk.f32.mxu0 %vm254_vm1, %v8526_v31 }
 0x4b1   :  { %6947 = vmatprep.subr.bf16.mxu0 %v6946_v47 }
 0x4b3   :  { %6788 = vmatmul.mubr.msk.f32.gmra.mrb[16].mxu0 %vm254_vm1, %v8530_v37 }
 0x4b4   :  { %6790 = vmatprep.mubr.msk.f32.mxu0 %vm254_vm1, %v8534_v28 }
 0x4b7   :  { %6791 = vmatmul.mubr.msk.f32.gmra.mrb[18].mxu0 %vm254_vm1, %v8538_v39 }
 0x4b8   :  { %6793 = vmatprep.mubr.msk.f32.mxu0 %vm254_vm1, %v8542_v52 }
 0x4bb   :  { %6794 = vmatmul.mubr.msk.f32.gmra.mrb[20].mxu0 %vm254_vm1, %v4207_v3 }
 0x4bc   :  { %6796 = vmatprep.mubr.msk.f32.mxu0 %vm254_vm1, %v8547_v55 }
 0x4bf   :  { %6797 = vmatmul.mubr.msk.f32.gmra.mrb[22].mxu0 %vm254_vm1, %v8551_v61 }
 0x4c0   :  { %6799 = vmatprep.mubr.msk.f32.mxu0 %vm254_vm1, %v8555_v62 }
 0x4c3   :  { %6800 = vmatmul.mubr.msk.f32.gmra.mrb[24].mxu0 %vm254_vm1, %v8559_v0 }
 0x4c4   :  { %6802 = vmatprep.mubr.msk.f32.mxu0 %vm254_vm1, %v8563_v9 }
 0x4c7   :  { %6803 = vmatmul.mubr.msk.f32.gmra.mrb[26].mxu0 %vm254_vm1, %v8567_v56 }
 0x4c8   :  { %6805 = vmatprep.mubr.msk.f32.mxu0 %vm254_vm1, %v8571_v60 }
 0x4cb   :  { %6806 = vmatmul.mubr.msk.f32.gmra.mrb[28].mxu0 %vm254_vm1, %v4215_v51 }
 0x4cc   :  { %6812 = vmatprep.mubr.msk.f32.mxu0 %vm254_vm1, %v8458_v38  ;;  %v4436_v38 = vld [vmem:[#allocation2 + $0x90] sm:$0xff] }
 0x4cf   :  { %6813 = vmatmul.mubr.msk.f32.vlgmr.msra.gmra.mrb[14].mxu0 %vm254_vm1, %v8462_v21  ;;  %v4444_v21 = vld [vmem:[#allocation2 + $0x130] sm:$0xff] }
 0x4d0   :  { %6949 = vmatpush3.bf16.msra.mxu0 %v6946_v47  ;;  %6815 = vmatprep.mubr.msk.f32.mxu0 %vm254_vm1, %v8466_v2 }
 0x4d1   :  { %6951 = vmatprep.subr.bf16.mxu0 %v6950_v45 }
 0x4d3   :  { %6816 = vmatmul.mubr.msk.f32.gmra.mrb[16].mxu0 %vm254_vm1, %v8470_v10 }
 0x4d4   :  { %6818 = vmatprep.mubr.msk.f32.mxu0 %vm254_vm1, %v8474_v11 }
 0x4d7   :  { %6819 = vmatmul.mubr.msk.f32.gmra.mrb[18].mxu0 %vm254_vm1, %v8478_v13 }
 0x4d8   :  { %6821 = vmatprep.mubr.msk.f32.mxu0 %vm254_vm1, %v8595_v24 }
 0x4db   :  { %6822 = vmatmul.mubr.msk.f32.gmra.mrb[20].mxu0 %vm254_vm1, %v4436_v38 }
 0x4dc   :  { %6824 = vmatprep.mubr.msk.f32.mxu0 %vm254_vm1, %v8487_v14 }
 0x4df   :  { %6825 = vmatmul.mubr.msk.f32.gmra.mrb[22].mxu0 %vm254_vm1, %v8491_v57 }
 0x4e0   :  { %6827 = vmatprep.mubr.msk.f32.mxu0 %vm254_vm1, %v8495_v16 }
 0x4e3   :  { %6828 = vmatmul.mubr.msk.f32.gmra.mrb[24].mxu0 %vm254_vm1, %v8499_v40 }
 0x4e4   :  { %6830 = vmatprep.mubr.msk.f32.mxu0 %vm254_vm1, %v8503_v25 }
 0x4e7   :  { %6831 = vmatmul.mubr.msk.f32.gmra.mrb[26].mxu0 %vm254_vm1, %v8507_v22 }
 0x4e8   :  { %6833 = vmatprep.mubr.msk.f32.mxu0 %vm254_vm1, %v8613_v26 }
 0x4eb   :  { %6834 = vmatmul.mubr.msk.f32.gmra.mrb[28].mxu0 %vm254_vm1, %v4444_v21 }
 0x4ec   :  { %6840 = vmatprep.mubr.msk.f32.mxu0 %vm254_vm1, %v8386_v30  ;;  %v4664_v30 = vld [vmem:[#allocation2 + $0x91] sm:$0xff] }
 0x4ef   :  { %6841 = vmatmul.mubr.msk.f32.vlgmr.msra.gmra.mrb[14].mxu0 %vm254_vm1, %v8398_v23  ;;  %v4672_v23 = vld [vmem:[#allocation2 + $0x131] sm:$0xff] }
 0x4f0   :  { %6953 = vmatpush3.bf16.msra.mxu0 %v6950_v45  ;;  %6843 = vmatprep.mubr.msk.f32.mxu0 %vm254_vm1, %v8402_v1  ;;  %v4892_v1 = vld [vmem:[#allocation2 + $0x92] sm:$0xff] }
 0x4f3   :  { %6844 = vmatmul.mubr.msk.f32.gmra.mrb[16].mxu0 %vm254_vm1, %v8406_v4  ;;  %v4900_v4 = vld [vmem:[#allocation2 + $0x132] sm:$0xff] }
 0x4f4   :  { %6846 = vmatprep.mubr.msk.f32.mxu0 %vm254_vm1, %v8410_v35 }
 0x4f7   :  { %6847 = vmatmul.mubr.msk.f32.gmra.mrb[18].mxu0 %vm254_vm1, %v8414_v5 }
 0x4f8   :  { %6849 = vmatprep.mubr.msk.f32.mxu0 %vm254_vm1, %v8637_v53 }
 0x4fb   :  { %6850 = vmatmul.mubr.msk.f32.gmra.mrb[20].mxu0 %vm254_vm1, %v4664_v30 }
 0x4fc   :  { %6852 = vmatprep.mubr.msk.f32.mxu0 %vm254_vm1, %v8423_v42 }
 0x4ff   :  { %6853 = vmatmul.mubr.msk.f32.gmra.mrb[22].mxu0 %vm254_vm1, %v8427_v20 }
 0x500   :  { %6855 = vmatprep.mubr.msk.f32.mxu0 %vm254_vm1, %v8431_v49 }
 0x503   :  { %6856 = vmatmul.mubr.msk.f32.gmra.mrb[24].mxu0 %vm254_vm1, %v8435_v48 }
 0x504   :  { %6858 = vmatprep.mubr.msk.f32.mxu0 %vm254_vm1, %v8439_v54 }
 0x507   :  { %6859 = vmatmul.mubr.msk.f32.gmra.mrb[26].mxu0 %vm254_vm1, %v8443_v18 }
 0x508   :  { %6861 = vmatprep.mubr.msk.f32.mxu0 %vm254_vm1, %v8655_v59 }
 0x50b   :  { %6862 = vmatmul.mubr.msk.f32.gmra.mrb[28].mxu0 %vm254_vm1, %v4672_v23 }
 0x50c   :  { %6868 = vmatprep.mubr.msk.f32.mxu0 %vm254_vm1, %v8522_v58 }
 0x50f   :  { %6869 = vmatmul.mubr.msk.f32.vlgmr.msra.gmra.mrb[14].mxu0 %vm254_vm1, %v8526_v31 }
 0x510   :  { %6871 = vmatprep.mubr.msk.f32.mxu0 %vm254_vm1, %v8530_v37 }
 0x513   :  { %6872 = vmatmul.mubr.msk.f32.gmra.mrb[16].mxu0 %vm254_vm1, %v8534_v28 }
 0x514   :  { %6874 = vmatprep.mubr.msk.f32.mxu0 %vm254_vm1, %v8538_v39 }
 0x517   :  { %6875 = vmatmul.mubr.msk.f32.gmra.mrb[18].mxu0 %vm254_vm1, %v8542_v52 }
 0x518   :  { %6877 = vmatprep.mubr.msk.f32.mxu0 %vm254_vm1, %v4207_v3 }
 0x51b   :  { %6878 = vmatmul.mubr.msk.f32.gmra.mrb[20].mxu0 %vm254_vm1, %v4892_v1 }
 0x51c   :  { %6880 = vmatprep.mubr.msk.f32.mxu0 %vm254_vm1, %v8551_v61 }
 0x51f   :  { %6881 = vmatmul.mubr.msk.f32.gmra.mrb[22].mxu0 %vm254_vm1, %v8555_v62 }
 0x520   :  { %6883 = vmatprep.mubr.msk.f32.mxu0 %vm254_vm1, %v8559_v0 }
 0x523   :  { %6884 = vmatmul.mubr.msk.f32.gmra.mrb[24].mxu0 %vm254_vm1, %v8563_v9 }
 0x524   :  { %6886 = vmatprep.mubr.msk.f32.mxu0 %vm254_vm1, %v8567_v56 }
 0x527   :  { %6887 = vmatmul.mubr.msk.f32.gmra.mrb[26].mxu0 %vm254_vm1, %v8571_v60 }
 0x528   :  { %6889 = vmatprep.mubr.msk.f32.mxu0 %vm254_vm1, %v4215_v51 }
 0x52b   :  { %6890 = vmatmul.mubr.msk.f32.gmra.mrb[28].mxu0 %vm254_vm1, %v4900_v4 }
 0x5e2   :  { %v8789_v35 = vpop.f32.mrb[14].mxu0 }
 0x5e3   :  { %v5116_v5 = vsel %vm254_vm1, %v8789_v35, 0.0  ;;  %v5158_v42 = vmul.f32 %v8789_v35, %v8789_v35  ;;  %v8795_v20 = vpop.f32.mrb[15].mxu0 }
 0x5e4   :  { %v5115_v49 = vsel %vm254_vm1, %v8795_v20, 0.0  ;;  %v5157_v48 = vmul.f32 %v8795_v20, %v8795_v20 }
 0x5e5   :  { %v5174_v54 = vsel %vm254_vm1, %v5158_v42, 0.0  ;;  %v5117_v18 = vadd.f32 %v5116_v5, %v5115_v49 }
 0x5e6   :  { %v5173_v2 = vsel %vm254_vm1, %v5157_v48, 0.0  ;;  %v8803_v10 = vpop.f32.mrb[16].mxu0 }
 0x5e7   :  { %v5175_v11 = vadd.f32 %v5174_v54, %v5173_v2  ;;  %v8805_v13 = vpop.f32.mrb[17].mxu0  ;;  %v5160_v14 = vmul.f32 %v8803_v10, %v8803_v10  ;;  %v5120_v25 = vsel %vm254_vm1, %v8803_v10, 0.0 }
 0x5e8   :  { %v5118_v57 = vsel %vm254_vm1, %v8805_v13, 0.0  ;;  %v5159_v16 = vmul.f32 %v8805_v13, %v8805_v13 }
 0x5e9   :  { %v5119_v40 = vadd.f32 %v5118_v57, %v5117_v18  ;;  %v5178_v58 = vsel %vm254_vm1, %v5160_v14, 0.0 }
 0x5ea   :  { %v5176_v22 = vsel %vm254_vm1, %v5159_v16, 0.0  ;;  %v8816_v6 = vpop.f32.mrb[18].mxu0 }
 0x5eb   :  { %v5177_v8 = vadd.f32 %v5176_v22, %v5175_v11  ;;  %v8818_v44 = vpop.f32.mrb[19].mxu0  ;;  %v5121_v46 = vadd.f32 %v5120_v25, %v5119_v40  ;;  %v5162_v31 = vmul.f32 %v8816_v6, %v8816_v6  ;;  %v5124_v52 = vsel %vm254_vm1, %v8816_v6, 0.0 }
 0x5ec   :  { %v5122_v37 = vsel %vm254_vm1, %v8818_v44, 0.0  ;;  %v5161_v28 = vmul.f32 %v8818_v44, %v8818_v44 }
 0x5ed   :  { %v5123_v39 = vadd.f32 %v5122_v37, %v5121_v46  ;;  %v5179_v41 = vadd.f32 %v5178_v58, %v5177_v8  ;;  %v5182_v56 = vsel %vm254_vm1, %v5162_v31, 0.0 }
 0x5ee   :  { %v5180_v55 = vsel %vm254_vm1, %v5161_v28, 0.0  ;;  %v8830_v61 = vpop.f32.mrb[20].mxu0 }
 0x5ef   :  { %v5181_v62 = vadd.f32 %v5180_v55, %v5179_v41  ;;  %v8832_v0 = vpop.f32.mrb[21].mxu0  ;;  %v5125_v9 = vadd.f32 %v5124_v52, %v5123_v39  ;;  %v5164_v60 = vmul.f32 %v8830_v61, %v8830_v61  ;;  %v5128_v26 = vsel %vm254_vm1, %v8830_v61, 0.0 }
 0x5f0   :  { %v5126_v27 = vsel %vm254_vm1, %v8832_v0, 0.0  ;;  %v5163_v33 = vmul.f32 %v8832_v0, %v8832_v0 }
 0x5f1   :  { %v5127_v17 = vadd.f32 %v5126_v27, %v5125_v9  ;;  %v5183_v24 = vadd.f32 %v5182_v56, %v5181_v62  ;;  %v5186_v47 = vsel %vm254_vm1, %v5164_v60, 0.0 }
 0x5f2   :  { %v5184_v29 = vsel %vm254_vm1, %v5163_v33, 0.0  ;;  %v8844_v32 = vpop.f32.mrb[22].mxu0 }
 0x5f3   :  { %v5129_v43 = vadd.f32 %v5128_v26, %v5127_v17  ;;  %v5185_v53 = vadd.f32 %v5184_v29, %v5183_v24  ;;  %v5137_v59 = vsel %vm254_vm1, %v8844_v32, 0.0  ;;  %v5166_v7 = vmul.f32 %v8844_v32, %v8844_v32  ;;  %v8850_v50 = vpop.f32.mrb[23].mxu0 }
 0x5f4   :  { %v5136_v3 = vsel %vm254_vm1, %v8850_v50, 0.0  ;;  %v5165_v51 = vmul.f32 %v8850_v50, %v8850_v50 }
 0x5f5   :  { %v5187_v12 = vadd.f32 %v5186_v47, %v5185_v53  ;;  %v5195_v15 = vsel %vm254_vm1, %v5166_v7, 0.0  ;;  %v5138_v45 = vadd.f32 %v5137_v59, %v5136_v3  ;;  %v5130_v54 = vrot.slane %v5129_v43, 4 }
 0x5f6   :  { %v5194_v38 = vsel %vm254_vm1, %v5165_v51, 0.0  ;;  %v8859_v21 = vpop.f32.mrb[24].mxu0 }
 0x5f7   :  { %v5196_v30 = vadd.f32 %v5195_v15, %v5194_v38  ;;  %v8861_v23 = vpop.f32.mrb[25].mxu0  ;;  %v5168_v1 = vmul.f32 %v8859_v21, %v8859_v21  ;;  %v5141_v18 = vsel %vm254_vm1, %v8859_v21, 0.0  ;;  %v5188_v22 = vrot.slane %v5187_v12, 4 }
 0x5f8   :  { %v5139_v4 = vsel %vm254_vm1, %v8861_v23, 0.0  ;;  %v5167_v5 = vmul.f32 %v8861_v23, %v8861_v23  ;;  %v5131_v37 = vadd.f32 %v5130_v54, %v5129_v43 }
 0x5f9   :  { %v5140_v42 = vadd.f32 %v5139_v4, %v5138_v45  ;;  %v5199_v2 = vsel %vm254_vm1, %v5168_v1, 0.0  ;;  %v5189_v60 = vadd.f32 %v5188_v22, %v5187_v12 }
 0x5fa   :  { %v5197_v49 = vsel %vm254_vm1, %v5167_v5, 0.0  ;;  %v8870_v48 = vpop.f32.mrb[26].mxu0  ;;  %v5132_v29 = vrot.slane %v5131_v37, 2 }
 0x5fb   :  { %v5198_v11 = vadd.f32 %v5197_v49, %v5196_v30  ;;  %v8875_v14 = vpop.f32.mrb[27].mxu0  ;;  %v5170_v57 = vmul.f32 %v8870_v48, %v8870_v48  ;;  %v5142_v16 = vadd.f32 %v5141_v18, %v5140_v42  ;;  %v5145_v28 = vsel %vm254_vm1, %v8870_v48, 0.0 }
 0x5fc   :  { %v5143_v40 = vsel %vm254_vm1, %v8875_v14, 0.0  ;;  %v5169_v25 = vmul.f32 %v8875_v14, %v8875_v14  ;;  %v5190_v59 = vrot.slane %v5189_v60, 2  ;;  %v5133_v51 = vadd.f32 %v5132_v29, %v5131_v37 }
 0x5fd   :  { %v5200_v8 = vadd.f32 %v5199_v2, %v5198_v11  ;;  %v5144_v46 = vadd.f32 %v5143_v40, %v5142_v16  ;;  %v5203_v39 = vsel %vm254_vm1, %v5170_v57, 0.0 }
 0x5fe   :  { %v5201_v58 = vsel %vm254_vm1, %v5169_v25, 0.0  ;;  %v8884_v31 = vpop.f32.mrb[28].mxu0  ;;  %v5191_v12 = vadd.f32 %v5190_v59, %v5189_v60  ;;  %v5134_v1 = vrot.slane %v5133_v51, 1 }
 0x5ff   :  { %v5202_v41 = vadd.f32 %v5201_v58, %v5200_v8  ;;  %v8889_v52 = vpop.f32.mrb[29].mxu0  ;;  %v5172_v55 = vmul.f32 %v8884_v31, %v8884_v31  ;;  %v5146_v62 = vadd.f32 %v5145_v28, %v5144_v46  ;;  %v5149_v24 = vsel %vm254_vm1, %v8884_v31, 0.0 }
 0x600   :  { %v5147_v9 = vsel %vm254_vm1, %v8889_v52, 0.0  ;;  %v5171_v56 = vmul.f32 %v8889_v52, %v8889_v52  ;;  %v5192_v42 = vrot.slane %v5191_v12, 1  ;;  %v5135_v18 = vadd.f32 %v5134_v1, %v5133_v51 }
 0x601   :  { %v5204_v27 = vadd.f32 %v5203_v39, %v5202_v41  ;;  %v5148_v33 = vadd.f32 %v5147_v9, %v5146_v62  ;;  %v5207_v43 = vsel %vm254_vm1, %v5172_v55, 0.0  ;;  %v6000_v39 = vld [vmem:[%s9013_s5] ss:$0 sm:$0xff] }
 0x602   :  { %v5205_v17 = vsel %vm254_vm1, %v5171_v56, 0.0  ;;  %v5193_v11 = vadd.f32 %v5192_v42, %v5191_v12  ;;  %v5483_v42 = vld [vmem:[#allocation3 + $0x8] sm:$0xff] }
 0x603   :  { %v5206_v26 = vadd.f32 %v5205_v17, %v5204_v27  ;;  %v5150_v53 = vadd.f32 %v5149_v24, %v5148_v33 }
 0x605   :  { %v5208_v7 = vadd.f32 %v5207_v43, %v5206_v26  ;;  %v5151_v47 = vrot.slane %v5150_v53, 4 }
 0x607   :  { %v5209_v3 = vrot.slane %v5208_v7, 4  ;;  %v5152_v15 = vadd.f32 %v5151_v47, %v5150_v53 }
 0x609   :  { %v5210_v45 = vadd.f32 %v5209_v3, %v5208_v7  ;;  %v5153_v38 = vrot.slane %v5152_v15, 2 }
 0x60b   :  { %v5211_v30 = vrot.slane %v5210_v45, 2  ;;  %v5154_v4 = vadd.f32 %v5153_v38, %v5152_v15 }
 0x60d   :  { %v5212_v5 = vadd.f32 %v5211_v30, %v5210_v45  ;;  %v5155_v49 = vrot.slane %v5154_v4, 1 }
 0x60f   :  { %v5213_v54 = vrot.slane %v5212_v5, 1  ;;  %v5156_v2 = vadd.f32 %v5155_v49, %v5154_v4  ;;  %v5484_v49 = vld [vmem:[#allocation3 + $0x10] sm:$0xff] }
 0x611   :  { %v5214_v57 = vadd.f32 %v5213_v54, %v5212_v5  ;;  %v5217_v16 = vsel %vm357_vm3, %v5156_v2, %v5135_v18  ;;  %v5482_v5 = vld [vmem:[#allocation3] sm:$0xff] }
 0x612   :  { %6897 = vmatmul.mubr.msk.f32.vlgmr.msra.gmra.mrb[26].mxu1 %vm254_vm1, %v5217_v16 }
 0x613   :  { %v5292_v40 = vsel %vm357_vm3, %v5214_v57, %v5193_v11  ;;  %6959 = vmatpush3.bf16.msra.mxu1 %v7413_v19  ;;  %6903 = vmatprep.mubr.msk.f32.mxu1 %vm7229_vm2, %v9018_v36  ;;  %v6001_v19 = vld [vmem:[%s9014_s6] ss:$0 sm:$0xff]  ;;  %v5485_v11 = vld [vmem:[#allocation3 + $0x18] sm:$0xff]  ;;  %v5487_v57 = vld [vmem:[#allocation3 + $0x28] sm:$0xff] }
 0x616   :  { %6904 = vmatmul.mubr.msk.f32.vlgmr.msra.gmra.mrb[28].mxu1 %vm254_vm1, %v5292_v40  ;;  %v5488_v40 = vld [vmem:[#allocation3 + $0x30] sm:$0xff] }
 0x6e5   :  { %v5286_v25 = vpop.f32.mrb[26].mxu1 }
 0x6e6   :  { %v6898_v22 = vpop.f32.mrb[27].mxu1  ;;  %v5365_v8 = vmul.f32 %v5286_v25, %v5286_v25 }
 0x6e7   :  { %v5490_v22 = vld [vmem:[#allocation3 + $0x40] sm:$0xff] }
 0x6e9   :  { %v5361_v46 = vpop.f32.mrb[28].mxu1 }
 0x6ea   :  { %v5366_v58 = vsub.f32 %v5361_v46, %v5365_v8  ;;  %v6905_v37 = vpop.f32.mrb[29].mxu1 }
 0x6eb   :  { %v5491_v37 = vld [vmem:[#allocation3 + $0x48] sm:$0xff] }
 0x6ec   :  { %v5367_v28 = vadd.f32 1e-05, %v5366_v58 }
 0x6ee   :  { %7226 = vrsqrt.f32 %v5367_v28  ;;  %v5492_v28 = vld [vmem:[#allocation3 + $0x50] sm:$0xff] }
 0x6f8   :  { %v7227_v41 = vpop.eup %7226 }
 0x6f9   :  { %v5375_v55 = vmul.f32 %v7227_v41, %v6000_v39  ;;  %v5493_v39 = vld [vmem:[#allocation3 + $0x58] sm:$0xff] }
 0x6fb   :  { %v5376_v36 = vmul.f32 %v5375_v55, %v5286_v25  ;;  %v5391_v62 = vrot.slane %v5375_v55, %v8009_v63  ;;  %v5489_v25 = vld [vmem:[#allocation3 + $0x38] sm:$0xff] }
 0x6fd   :  { %v5383_v9 = vsub.f32 %v6001_v19, %v5376_v36  ;;  %v5392_v56 = vcombine.high %v5391_v62, %v5391_v62  ;;  %v5399_v60 = vrot.slane %v5391_v62, %v8009_v63  ;;  %v5494_v62 = vld [vmem:[#allocation3 + $0x60] sm:$0xff] }
 0x6ff   :  { %v5406_v27 = vrot.slane %v5392_v56, %v8009_v63  ;;  %v5410_v33 = vrot.slane %v5399_v60, %v8023_v34  ;;  %v5440_v17 = vrot.slane %v5383_v9, %v8009_v63  ;;  %v5495_v9 = vld [vmem:[#allocation3 + $0x68] sm:$0xff]  ;;  %v5496_v56 = vld [vmem:[#allocation3 + $0x70] sm:$0xff] }
 0x701   :  { %v5414_v24 = vrot.slane %v5406_v27, %v8023_v34  ;;  %v5417_v26 = vmul.f32 %v5410_v33, %v8795_v20  ;;  %v5418_v29 = vmul.f32 %v8789_v35, %v5410_v33  ;;  %v5419_v43 = vmul.f32 %v5410_v33, %v8805_v13 }
 0x702   :  { %v5420_v53 = vmul.f32 %v8803_v10, %v5410_v33  ;;  %v5421_v59 = vmul.f32 %v5410_v33, %v8818_v44  ;;  %v5422_v7 = vmul.f32 %v8816_v6, %v5410_v33  ;;  %v5423_v47 = vmul.f32 %v5410_v33, %v8832_v0 }
 0x703   :  { %v5424_v3 = vmul.f32 %v8830_v61, %v5410_v33  ;;  %v5425_v51 = vmul.f32 %v5414_v24, %v8850_v50  ;;  %v5426_v15 = vmul.f32 %v8844_v32, %v5414_v24  ;;  %v5427_v20 = vmul.f32 %v5414_v24, %v8861_v23 }
 0x704   :  { %v5428_v35 = vmul.f32 %v8859_v21, %v5414_v24  ;;  %v5429_v13 = vmul.f32 %v5414_v24, %v8875_v14  ;;  %v5430_v10 = vmul.f32 %v8870_v48, %v5414_v24  ;;  %v5431_v44 = vmul.f32 %v5414_v24, %v8889_v52 }
 0x705   :  { %v5432_v6 = vmul.f32 %v8884_v31, %v5414_v24  ;;  %v5441_v45 = vcombine.high %v5440_v17, %v5440_v17  ;;  %v5448_v0 = vrot.slane %v5440_v17, %v8009_v63  ;;  %v5497_v24 = vld [vmem:[#allocation3 + $0x78] sm:$0xff] }
 0x707   :  { %v5455_v61 = vrot.slane %v5441_v45, %v8009_v63  ;;  %v5459_v50 = vrot.slane %v5448_v0, %v8023_v34 }
 0x709   :  { %v5463_v32 = vrot.slane %v5455_v61, %v8023_v34  ;;  %v5466_v23 = vadd.f32 %v5459_v50, %v5417_v26  ;;  %v5467_v12 = vadd.f32 %v5459_v50, %v5418_v29  ;;  %v5468_v21 = vadd.f32 %v5459_v50, %v5419_v43  ;;  %v5486_v34 = vld [vmem:[#allocation3 + $0x20] sm:$0xff] }
 0x70a   :  { %v5469_v38 = vadd.f32 %v5459_v50, %v5420_v53  ;;  %v5470_v14 = vadd.f32 %v5459_v50, %v5421_v59  ;;  %v5471_v30 = vadd.f32 %v5459_v50, %v5422_v7  ;;  %v5472_v48 = vadd.f32 %v5459_v50, %v5423_v47 }
 0x70b   :  { %v5473_v1 = vadd.f32 %v5459_v50, %v5424_v3  ;;  %v5474_v52 = vadd.f32 %v5463_v32, %v5425_v51  ;;  %v5475_v4 = vadd.f32 %v5463_v32, %v5426_v15  ;;  %v5476_v31 = vadd.f32 %v5463_v32, %v5427_v20 }
 0x70c   :  { %v5477_v54 = vadd.f32 %v5463_v32, %v5428_v35  ;;  %v5478_v63 = vadd.f32 %v5463_v32, %v5429_v13  ;;  %v5479_v18 = vadd.f32 %v5463_v32, %v5430_v10  ;;  %v5480_v2 = vadd.f32 %v5463_v32, %v5431_v44 }
 0x70d   :  { %v5481_v16 = vadd.f32 %v5463_v32, %v5432_v6  ;;  %v5498_v8 = vadd.f32 %v5482_v5, %v5466_v23  ;;  %v5499_v46 = vadd.f32 %v5483_v42, %v5467_v12  ;;  %v5500_v58 = vadd.f32 %v5484_v49, %v5468_v21 }
 0x70e   :  { %v5501_v41 = vadd.f32 %v5485_v11, %v5469_v38  ;;  %v5502_v55 = vadd.f32 %v5486_v34, %v5470_v14  ;;  %v5503_v19 = vadd.f32 %v5487_v57, %v5471_v30  ;;  %v5504_v36 = vadd.f32 %v5488_v40, %v5472_v48 }
 0x70f   :  { %v5505_v60 = vadd.f32 %v5489_v25, %v5473_v1  ;;  %v5506_v27 = vadd.f32 %v5490_v22, %v5474_v52  ;;  %v5507_v33 = vadd.f32 %v5491_v37, %v5475_v4  ;;  %v5508_v17 = vadd.f32 %v5492_v28, %v5476_v31 }
 0x710   :  { %v5509_v26 = vadd.f32 %v5493_v39, %v5477_v54  ;;  %v5510_v29 = vadd.f32 %v5494_v62, %v5478_v63  ;;  %v5511_v43 = vadd.f32 %v5495_v9, %v5479_v18  ;;  %v5512_v53 = vadd.f32 %v5496_v56, %v5480_v2 }
 0x711   :  { %v5513_v59 = vadd.f32 %v5497_v24, %v5481_v16  ;;  %v5514_v7 = vmax.f32 %v5498_v8, 0.0  ;;  %v5515_v47 = vmax.f32 %v5499_v46, 0.0  ;;  %v5516_v3 = vmax.f32 %v5500_v58, 0.0 }
 0x712   :  { %v5517_v51 = vmax.f32 %v5501_v41, 0.0  ;;  %v5518_v15 = vmax.f32 %v5502_v55, 0.0  ;;  %v5519_v20 = vmax.f32 %v5503_v19, 0.0  ;;  %v5520_v35 = vmax.f32 %v5504_v36, 0.0 }
 0x713   :  { %v5521_v13 = vmax.f32 %v5505_v60, 0.0  ;;  %v5522_v10 = vmax.f32 %v5506_v27, 0.0  ;;  %v5523_v44 = vmax.f32 %v5507_v33, 0.0  ;;  %v5524_v6 = vmax.f32 %v5508_v17, 0.0  ;;  %5530 = vst.msk [vmem:[%s9015_s11] sm:$0xff] %vm254_vm1, %v5514_v7  ;;  %5531 = vst.msk [vmem:[%s9015_s11 + $0x8] sm:$0xff] %vm254_vm1, %v5515_v47 }
 0x714   :  { %5532 = vst.msk [vmem:[%s9015_s11 + $0x10] sm:$0xff] %vm254_vm1, %v5516_v3  ;;  %v5525_v45 = vmax.f32 %v5509_v26, 0.0  ;;  %v5526_v0 = vmax.f32 %v5510_v29, 0.0  ;;  %v5527_v61 = vmax.f32 %v5511_v43, 0.0  ;;  %v5528_v50 = vmax.f32 %v5512_v53, 0.0  ;;  %5533 = vst.msk [vmem:[%s9015_s11 + $0x18] sm:$0xff] %vm254_vm1, %v5517_v51 }
 0x715   :  { %5534 = vst.msk [vmem:[%s9015_s11 + $0x20] sm:$0xff] %vm254_vm1, %v5518_v15  ;;  %5535 = vst.msk [vmem:[%s9015_s11 + $0x28] sm:$0xff] %vm254_vm1, %v5519_v20  ;;  %v5529_v32 = vmax.f32 %v5513_v59, 0.0 }
 0x716   :  { %5536 = vst.msk [vmem:[%s9015_s11 + $0x30] sm:$0xff] %vm254_vm1, %v5520_v35  ;;  %5537 = vst.msk [vmem:[%s9015_s11 + $0x38] sm:$0xff] %vm254_vm1, %v5521_v13 }
 0x717   :  { %5538 = vst.msk [vmem:[%s9015_s11 + $0x40] sm:$0xff] %vm254_vm1, %v5522_v10  ;;  %5539 = vst.msk [vmem:[%s9015_s11 + $0x48] sm:$0xff] %vm254_vm1, %v5523_v44 }
 0x718   :  { %5540 = vst.msk [vmem:[%s9015_s11 + $0x50] sm:$0xff] %vm254_vm1, %v5524_v6  ;;  %5541 = vst.msk [vmem:[%s9015_s11 + $0x58] sm:$0xff] %vm254_vm1, %v5525_v45 }
 0x719   :  { %5542 = vst.msk [vmem:[%s9015_s11 + $0x60] sm:$0xff] %vm254_vm1, %v5526_v0  ;;  %5543 = vst.msk [vmem:[%s9015_s11 + $0x68] sm:$0xff] %vm254_vm1, %v5527_v61 }
 0x71a   :  { %5544 = vst.msk [vmem:[%s9015_s11 + $0x70] sm:$0xff] %vm254_vm1, %v5528_v50  ;;  %5545 = vst.msk [vmem:[%s9015_s11 + $0x78] sm:$0xff] %vm254_vm1, %v5529_v32 }

</bundles_post_ra>
